<compile_context>
chip_gen: v6e
topology: v6e:2x2x1
jax: 0.10.0
libtpu: 0.0.40
codegen_flags: <defaults>
</compile_context>

<pallas_src>
import jax
import jax.numpy as jnp
from jax.experimental import pallas as pl
from jax.experimental.pallas import tpu as pltpu


def cdconv_kernel(x_ref, w_ref, o_ref, xp_ref, col_ref):
    """One batch element per grid step.

    x_ref  : (1, H, W, C)     bf16 input block (unpadded; halo built in VMEM)
    w_ref  : (9*C, O_pad)     bf16 fused conv weight (central-difference folded in)
    o_ref  : (1, H*W, O_pad)  f32 output block (lane-dense, O padded to 128)
    xp_ref : (H+2, W+2, C)    f32 VMEM scratch (zero-padded image)
    col_ref: (H*W, 9*C)       f32 VMEM scratch (im2col matrix)
    """
    H = x_ref.shape[1]
    W = x_ref.shape[2]
    C = x_ref.shape[3]

    # Build the zero-padded image in VMEM (no jnp.pad / extra HBM stream).
    xp_ref[...] = jnp.zeros_like(xp_ref)
    xp_ref[1:H + 1, 1:W + 1, :] = x_ref[0].astype(xp_ref.dtype)
    xp = xp_ref[...]

    # im2col: the 9 shifted taps -> one (H*W, 9C) matrix; single MXU matmul below.
    for dy in range(3):
        for dx in range(3):
            j = dy * 3 + dx
            tap = xp[dy:dy + H, dx:dx + W, :].reshape(H * W, C)
            col_ref[:, j * C:(j + 1) * C] = tap

    # One matmul: bf16 operands, f32 accumulation on the MXU, fused ReLU.
    acc = jnp.dot(col_ref[...].astype(jnp.bfloat16), w_ref[...],
                  preferred_element_type=jnp.float32)
    o_ref[0] = jnp.maximum(acc, 0.0).astype(o_ref.dtype)


def cdconv_norm_act(x_nhwc, w_oihw, bias):
    """relu(conv3x3_pad1(x, W, b) - conv1x1(x, W.sum(2,3), b)) as one fused conv.

    x_nhwc: (N, H, W, C) f32; w_oihw: (O, C, 3, 3) f32 (PyTorch layout); bias: (O,).
    Returns (N, H, W, O) f32.
    """
    del bias  # biases cancel exactly in out - out_diff
    N, H, W, C = x_nhwc.shape
    O = w_oihw.shape[0]
    O_pad = ((O + 127) // 128) * 128  # lane-dense output stores

    # Fused central-difference weight in HWIO, flattened to (9C, O_pad), bf16.
    w_hwio = jnp.transpose(w_oihw, (2, 3, 1, 0)).astype(jnp.float32)       # (3,3,C,O)
    w_fused = w_hwio.at[1, 1].add(-jnp.sum(w_hwio, axis=(0, 1)))           # fold 1x1 diff conv
    w_mat = jnp.zeros((9 * C, O_pad), jnp.bfloat16).at[:, :O].set(
        w_fused.astype(jnp.bfloat16).reshape(9 * C, O))

    x_bf = x_nhwc.astype(jnp.bfloat16)  # halve HBM input bytes

    # NOTE: for large H/W add a spatial tile axis (with 1-row halo) and set
    # pltpu.CompilerParams(vmem_limit_bytes=...) — unnecessary at these shapes.
    out_padded = pl.pallas_call(
        cdconv_kernel,
        out_shape=jax.ShapeDtypeStruct((N, H * W, O_pad), jnp.float32),
        grid_spec=pltpu.PrefetchScalarGridSpec(
            num_scalar_prefetch=0,
            grid=(N,),
            in_specs=[
                pl.BlockSpec((1, H, W, C), lambda n: (n, 0, 0, 0)),
                pl.BlockSpec((9 * C, O_pad), lambda n: (0, 0)),
            ],
            out_specs=pl.BlockSpec((1, H * W, O_pad), lambda n: (n, 0, 0)),
            scratch_shapes=[
                pltpu.VMEM((H + 2, W + 2, C), jnp.float32),
                pltpu.VMEM((H * W, 9 * C), jnp.float32),
            ],
        ),
        compiler_params=pltpu.CompilerParams(
            dimension_semantics=("parallel",)),
    )(x_bf, w_mat)

    # Slice off padded output channels and restore spatial shape (cheap metadata ops).
    return out_padded[:, :, :O].reshape(N, H, W, O)


if __name__ == "__main__":
    # Small shapes consistent with the module: N=2, C_in=4, C_out=8, 16x16 spatial.
    N, C_in, C_out, H, W = 2, 4, 8, 16, 16

    key = jax.random.PRNGKey(0)
    kx, kw, kb = jax.random.split(key, 3)

    # Deterministic synthetic parameters (PyTorch conv weight layout OIHW).
    w_oihw = 0.1 * jax.random.normal(kw, (C_out, C_in, 3, 3), dtype=jnp.float32)
    bias = 0.1 * jax.random.normal(kb, (C_out,), dtype=jnp.float32)

    # NCHW input like PyTorch, converted to NHWC for the kernel.
    x_nchw = jax.random.normal(kx, (N, C_in, H, W), dtype=jnp.float32)
    x_nhwc = jnp.transpose(x_nchw, (0, 2, 3, 1))

    out = cdconv_norm_act(x_nhwc, w_oihw, bias)
    out = jax.block_until_ready(out)
    assert out.shape == (N, H, W, C_out)

    # --- Reference 1 (semantic): exact PyTorch-module math, pure f32 ----------
    w_hwio = jnp.transpose(w_oihw, (2, 3, 1, 0))
    ref_conv = jax.lax.conv_general_dilated(
        x_nhwc, w_hwio, window_strides=(1, 1), padding=((1, 1), (1, 1)),
        dimension_numbers=("NHWC", "HWIO", "NHWC")) + bias
    k_diff = jnp.sum(w_hwio, axis=(0, 1))                    # (C, O)
    ref_diff = jnp.einsum("nhwc,co->nhwo", x_nhwc, k_diff) + bias
    expected_f32 = jnp.maximum(ref_conv - ref_diff, 0.0)
    err_sem = jnp.max(jnp.abs(out - expected_f32))
    assert jnp.allclose(out, expected_f32, atol=1e-1, rtol=1e-1), \
        f"semantic max abs err {err_sem}"

    # --- Reference 2 (numeric): same fused math on bf16-rounded operands ------
    w_fused = w_hwio.at[1, 1].add(-jnp.sum(w_hwio, axis=(0, 1)))
    w_fused_bf = w_fused.astype(jnp.bfloat16).astype(jnp.float32)
    x_bf = x_nhwc.astype(jnp.bfloat16).astype(jnp.float32)
    ref_fused = jax.lax.conv_general_dilated(
        x_bf, w_fused_bf, window_strides=(1, 1), padding=((1, 1), (1, 1)),
        dimension_numbers=("NHWC", "HWIO", "NHWC"),
        precision=jax.lax.Precision.HIGHEST)
    expected_bf = jnp.maximum(ref_fused, 0.0)
    err_num = jnp.max(jnp.abs(out - expected_bf))
    assert jnp.allclose(out, expected_bf, atol=2e-3, rtol=2e-3), \
        f"numeric max abs err {err_num}"

    print("KERNEL_OK")
</pallas_src>

<mosaic_0001>
module attributes {stable_mosaic.version = 11 : i64} {
  func.func @cdconv_kernel(%arg0: i32, %arg1: memref<1x16x16x4xbf16, #tpu.memory_space<vmem>>, %arg2: memref<36x128xbf16, #tpu.memory_space<vmem>>, %arg3: memref<1x256x128xf32, #tpu.memory_space<vmem>>, %arg4: memref<18x18x4xf32, #tpu.memory_space<vmem>>, %arg5: memref<256x36xf32, #tpu.memory_space<vmem>>) attributes {dimension_semantics = [#tpu.dimension_semantics<parallel>], iteration_bounds = array<i64: 2>, scalar_prefetch = 0 : i64, scratch_operands = 2 : i64, tpu.core_type = #tpu.core_type<tc>, window_params = [{transform_indices = @transform_0, window_bounds = array<i64: 1, 16, 16, 4>}, {pipeline_mode = #tpu.pipeline_mode<synchronous>, transform_indices = @transform_1, window_bounds = array<i64: 36, 128>}, {transform_indices = @transform_2, window_bounds = array<i64: 1, 256, 128>}]} {
    %cst = arith.constant 0.000000e+00 : f32
    %0 = vector.broadcast %cst : f32 to vector<18x18x4xf32>
    %c0 = arith.constant 0 : index
    %c0_0 = arith.constant 0 : index
    %c0_1 = arith.constant 0 : index
    %1 = vector.load %arg4[%c0, %c0_0, %c0_1] : memref<18x18x4xf32, #tpu.memory_space<vmem>>, vector<18x18x4xf32>
    tpu.vector_store %arg4[%c0, %c0_0, %c0_1], %0 {strides = array<i32>} : memref<18x18x4xf32, #tpu.memory_space<vmem>>, vector<18x18x4xf32>,
    %c0_2 = arith.constant 0 : index
    %c0_3 = arith.constant 0 : index
    %c0_4 = arith.constant 0 : index
    %c0_5 = arith.constant 0 : index
    %2 = vector.load %arg1[%c0_2, %c0_3, %c0_4, %c0_5] : memref<1x16x16x4xbf16, #tpu.memory_space<vmem>>, vector<1x16x16x4xbf16>
    %3 = vector.shape_cast %2 : vector<1x16x16x4xbf16> to vector<16x16x4xbf16>
    %4 = arith.extf %3 : vector<16x16x4xbf16> to vector<16x16x4xf32>
    %c1 = arith.constant 1 : index
    %c1_6 = arith.constant 1 : index
    %c0_7 = arith.constant 0 : index
    %5 = vector.load %arg4[%c1, %c1_6, %c0_7] : memref<18x18x4xf32, #tpu.memory_space<vmem>>, vector<16x16x4xf32>
    tpu.vector_store %arg4[%c1, %c1_6, %c0_7], %4 {strides = array<i32>} : memref<18x18x4xf32, #tpu.memory_space<vmem>>, vector<16x16x4xf32>,
    %c0_8 = arith.constant 0 : index
    %c0_9 = arith.constant 0 : index
    %c0_10 = arith.constant 0 : index
    %6 = vector.load %arg4[%c0_8, %c0_9, %c0_10] : memref<18x18x4xf32, #tpu.memory_space<vmem>>, vector<18x18x4xf32>
    %7 = vector.extract_strided_slice %6 {offsets = [0, 0, 0], sizes = [16, 16, 4], strides = [1, 1, 1]} : vector<18x18x4xf32> to vector<16x16x4xf32>
    %8 = vector.shape_cast %7 : vector<16x16x4xf32> to vector<256x4xf32>
    %c0_11 = arith.constant 0 : index
    %c0_12 = arith.constant 0 : index
    %9 = vector.load %arg5[%c0_11, %c0_12] : memref<256x36xf32, #tpu.memory_space<vmem>>, vector<256x4xf32>
    tpu.vector_store %arg5[%c0_11, %c0_12], %8 {strides = array<i32>} : memref<256x36xf32, #tpu.memory_space<vmem>>, vector<256x4xf32>,
    %10 = vector.extract_strided_slice %6 {offsets = [0, 1, 0], sizes = [16, 16, 4], strides = [1, 1, 1]} : vector<18x18x4xf32> to vector<16x16x4xf32>
    %11 = vector.shape_cast %10 : vector<16x16x4xf32> to vector<256x4xf32>
    %c0_13 = arith.constant 0 : index
    %c4 = arith.constant 4 : index
    %12 = vector.load %arg5[%c0_13, %c4] : memref<256x36xf32, #tpu.memory_space<vmem>>, vector<256x4xf32>
    tpu.vector_store %arg5[%c0_13, %c4], %11 {strides = array<i32>} : memref<256x36xf32, #tpu.memory_space<vmem>>, vector<256x4xf32>,
    %13 = vector.extract_strided_slice %6 {offsets = [0, 2, 0], sizes = [16, 16, 4], strides = [1, 1, 1]} : vector<18x18x4xf32> to vector<16x16x4xf32>
    %14 = vector.shape_cast %13 : vector<16x16x4xf32> to vector<256x4xf32>
    %c0_14 = arith.constant 0 : index
    %c8 = arith.constant 8 : index
    %15 = vector.load %arg5[%c0_14, %c8] : memref<256x36xf32, #tpu.memory_space<vmem>>, vector<256x4xf32>
    tpu.vector_store %arg5[%c0_14, %c8], %14 {strides = array<i32>} : memref<256x36xf32, #tpu.memory_space<vmem>>, vector<256x4xf32>,
    %16 = vector.extract_strided_slice %6 {offsets = [1, 0, 0], sizes = [16, 16, 4], strides = [1, 1, 1]} : vector<18x18x4xf32> to vector<16x16x4xf32>
    %17 = vector.shape_cast %16 : vector<16x16x4xf32> to vector<256x4xf32>
    %c0_15 = arith.constant 0 : index
    %c12 = arith.constant 12 : index
    %18 = vector.load %arg5[%c0_15, %c12] : memref<256x36xf32, #tpu.memory_space<vmem>>, vector<256x4xf32>
    tpu.vector_store %arg5[%c0_15, %c12], %17 {strides = array<i32>} : memref<256x36xf32, #tpu.memory_space<vmem>>, vector<256x4xf32>,
    %19 = vector.extract_strided_slice %6 {offsets = [1, 1, 0], sizes = [16, 16, 4], strides = [1, 1, 1]} : vector<18x18x4xf32> to vector<16x16x4xf32>
    %20 = vector.shape_cast %19 : vector<16x16x4xf32> to vector<256x4xf32>
    %c0_16 = arith.constant 0 : index
    %c16 = arith.constant 16 : index
    %21 = vector.load %arg5[%c0_16, %c16] : memref<256x36xf32, #tpu.memory_space<vmem>>, vector<256x4xf32>
    tpu.vector_store %arg5[%c0_16, %c16], %20 {strides = array<i32>} : memref<256x36xf32, #tpu.memory_space<vmem>>, vector<256x4xf32>,
    %22 = vector.extract_strided_slice %6 {offsets = [1, 2, 0], sizes = [16, 16, 4], strides = [1, 1, 1]} : vector<18x18x4xf32> to vector<16x16x4xf32>
    %23 = vector.shape_cast %22 : vector<16x16x4xf32> to vector<256x4xf32>
    %c0_17 = arith.constant 0 : index
    %c20 = arith.constant 20 : index
    %24 = vector.load %arg5[%c0_17, %c20] : memref<256x36xf32, #tpu.memory_space<vmem>>, vector<256x4xf32>
    tpu.vector_store %arg5[%c0_17, %c20], %23 {strides = array<i32>} : memref<256x36xf32, #tpu.memory_space<vmem>>, vector<256x4xf32>,
    %25 = vector.extract_strided_slice %6 {offsets = [2, 0, 0], sizes = [16, 16, 4], strides = [1, 1, 1]} : vector<18x18x4xf32> to vector<16x16x4xf32>
    %26 = vector.shape_cast %25 : vector<16x16x4xf32> to vector<256x4xf32>
    %c0_18 = arith.constant 0 : index
    %c24 = arith.constant 24 : index
    %27 = vector.load %arg5[%c0_18, %c24] : memref<256x36xf32, #tpu.memory_space<vmem>>, vector<256x4xf32>
    tpu.vector_store %arg5[%c0_18, %c24], %26 {strides = array<i32>} : memref<256x36xf32, #tpu.memory_space<vmem>>, vector<256x4xf32>,
    %28 = vector.extract_strided_slice %6 {offsets = [2, 1, 0], sizes = [16, 16, 4], strides = [1, 1, 1]} : vector<18x18x4xf32> to vector<16x16x4xf32>
    %29 = vector.shape_cast %28 : vector<16x16x4xf32> to vector<256x4xf32>
    %c0_19 = arith.constant 0 : index
    %c28 = arith.constant 28 : index
    %30 = vector.load %arg5[%c0_19, %c28] : memref<256x36xf32, #tpu.memory_space<vmem>>, vector<256x4xf32>
    tpu.vector_store %arg5[%c0_19, %c28], %29 {strides = array<i32>} : memref<256x36xf32, #tpu.memory_space<vmem>>, vector<256x4xf32>,
    %31 = vector.extract_strided_slice %6 {offsets = [2, 2, 0], sizes = [16, 16, 4], strides = [1, 1, 1]} : vector<18x18x4xf32> to vector<16x16x4xf32>
    %32 = vector.shape_cast %31 : vector<16x16x4xf32> to vector<256x4xf32>
    %c0_20 = arith.constant 0 : index
    %c32 = arith.constant 32 : index
    %33 = vector.load %arg5[%c0_20, %c32] : memref<256x36xf32, #tpu.memory_space<vmem>>, vector<256x4xf32>
    tpu.vector_store %arg5[%c0_20, %c32], %32 {strides = array<i32>} : memref<256x36xf32, #tpu.memory_space<vmem>>, vector<256x4xf32>,
    %c0_21 = arith.constant 0 : index
    %c0_22 = arith.constant 0 : index
    %34 = vector.load %arg5[%c0_21, %c0_22] : memref<256x36xf32, #tpu.memory_space<vmem>>, vector<256x36xf32>
    %35 = arith.truncf %34 : vector<256x36xf32> to vector<256x36xbf16>
    %c0_23 = arith.constant 0 : index
    %c0_24 = arith.constant 0 : index
    %36 = vector.load %arg2[%c0_23, %c0_24] : memref<36x128xbf16, #tpu.memory_space<vmem>>, vector<36x128xbf16>
    %cst_25 = arith.constant dense<0.000000e+00> : vector<256x128xf32>
    %37 = tpu.matmul %35, %36, %cst_25 {dimension_numbers = #tpu.dot_dimension_numbers<[1], [0], [0], [1], [0, 0, 1, 1], [], []>} : vector<256x36xbf16>, vector<36x128xbf16>, vector<256x128xf32> -> vector<256x128xf32>
    %cst_26 = arith.constant 0.000000e+00 : f32
    %38 = vector.broadcast %cst_26 : f32 to vector<256x128xf32>
    %39 = arith.maximumf %37, %38 : vector<256x128xf32>
    %c0_27 = arith.constant 0 : index
    %c0_28 = arith.constant 0 : index
    %c0_29 = arith.constant 0 : index
    %40 = vector.load %arg3[%c0_27, %c0_28, %c0_29] : memref<1x256x128xf32, #tpu.memory_space<vmem>>, vector<1x256x128xf32>
    %41 = vector.shape_cast %40 : vector<1x256x128xf32> to vector<256x128xf32>
    %42 = vector.shape_cast %39 : vector<256x128xf32> to vector<1x256x128xf32>
    tpu.vector_store %arg3[%c0_27, %c0_28, %c0_29], %42 {strides = array<i32>} : memref<1x256x128xf32, #tpu.memory_space<vmem>>, vector<1x256x128xf32>,
    return
  }
  func.func @transform_0(%arg0: i32) -> (i32, i32, i32, i32) {
    %c0_i32 = arith.constant 0 : i32
    %c0_i32_0 = arith.constant 0 : i32
    %c0_i32_1 = arith.constant 0 : i32
    %c0_i32_2 = arith.constant 0 : i32
    return %arg0, %c0_i32, %c0_i32_0, %c0_i32_1 : i32, i32, i32, i32
  }
  func.func @transform_1(%arg0: i32) -> (i32, i32) {
    %c0_i32 = arith.constant 0 : i32
    %c0_i32_0 = arith.constant 0 : i32
    %c0_i32_1 = arith.constant 0 : i32
    return %c0_i32, %c0_i32_0 : i32, i32
  }
  func.func @transform_2(%arg0: i32) -> (i32, i32, i32) {
    %c0_i32 = arith.constant 0 : i32
    %c0_i32_0 = arith.constant 0 : i32
    %c0_i32_1 = arith.constant 0 : i32
    return %arg0, %c0_i32, %c0_i32_0 : i32, i32, i32
  }
}

</mosaic_0001>

<bundles_post_ra>
// kernel: tpu_custom_call.1
= control target key start
LH: loop header
LB: loop body
LE: loop exit
PB: predicated region body
PF: predicated region fallthrough
CT: control target
= control target key end

     0   :  { %7 = vsyncpa [#allocation5], 0  ;;  %s3900_s0 = inlined_call_operand.vmem [shape: bf16[2,16,16,4], index: 0, kind: input, shape index: {}]   ;;  %s3901_s1 = inlined_call_operand.vmem [shape: bf16[36,128], index: 1, kind: input, shape index: {}]   ;;  %s3902_s2 = inlined_call_operand.hbm [shape: f32[2,256,128], index: 2, kind: output, shape index: {}]  }
   0x1   :  { %9 = vsyncpa [#allocation5 + $0x1], 0  ;;  %s2389_s9 = smov 0   ;;  %s2391_s10 = smov 0  }
   0x2   :  { %s2393_s11 = smov 0   ;;  %s2395_s12 = smov 0  }
   0x3 LB: > { %s2410_s13 = sadd.s32 4294967295, %s2361_s12   ;;  %s2072_s14 = sadd.s32 4294967294, %s2361_s12   ;;  %s2361_s12 = sphi %s2395_s12, %s4060_s12   ;;  %s2357_s11 = sphi %s2393_s11, %s4059_s11   ;;  %s2353_s10 = sphi %s2391_s10, %s4058_s10   ;;  %s2349_s9 = sphi %s2389_s9, %s4057_s9  }
   0x4   : > { %s2414_s15 = sadd.s32 1, %s2361_s12   ;;  %s69_s16 = sadd.s32 1, %s2357_s11 }
   0x5   : > { %s66_s17 = ssub.s32 %s2361_s12, %s2414_s15  ;;  %p79_p0 = scmp.ne.s32.totalorder %s2357_s11, %s2353_s10 }
   0x6   : > { %p67_p1 = scmp.eq.s32.totalorder %s66_s17, 0  ;;  %p80_p2 = scmp.eq.s32.totalorder %s2410_s13, 1 }
   0x7   : > { %p85_p3 = scmp.ne.s32.totalorder %s2353_s10, %s2349_s9  ;;  %p86_p4 = scmp.eq.s32.totalorder %s2072_s14, 1 }
   0x8   : > { %s2425_s18 = scalar_select %p67_p1, %s2357_s11, %s69_s16  }
   0x9   : > { %p2427_p5 = por %p80_p2, %p79_p0  ;;  %p2431_p6 = por %p86_p4, %p85_p3 }
   0xa   : > { %p2075_p7 = scmp.ge.s32.totalorder %s2361_s12, 1  ;;  %p115_p8 = scmp.lt.s32.totalorder %s2361_s12, 3 }
   0xc   : > { %p116_p9 = pnand %p2075_p7, %p115_p8 }
   0xe   : > { %119 = sbr.rel (%p116_p9) target bundleno = 907 (0x38b), region = 28 }
  0x13   : > { %vm143_vm0 = vcmask 31744   ;;  %vm146_vm1 = vcmask 25600   ;;  %p137_p10 = scmp.lt.s32.totalorder %s2410_s13, 1  ;;  %v2363_v0 = vmov 0.0   ;;  %vm430_vm2 = vcmask 1046528   ;;  %s2364_s26 = smov 4  }
  0x14   : > { %144 = vst.msk [vmem:[#allocation2] sm:$0xff] %vm143_vm0, %v2363_v0  ;;  %145 = vst.msk [vmem:[#allocation2 + $0x8] sm:$0xff] %vm143_vm0, %v2363_v0  ;;  %vm640_vm3 = vcmask 1045504   ;;  %s2365_s27 = smov 8   ;;  %vm607_vm4 = vcmask 64544   ;;  %s2366_s28 = smov 12  }
  0x15   : > { %148 = vst.msk [vmem:[#allocation2 + $0x18] sm:$0xff] %vm143_vm0, %v2363_v0  ;;  %149 = vst.msk [vmem:[#allocation2 + $0x20] sm:$0xff] %vm143_vm0, %v2363_v0  ;;  %s138_s21 = scalar_select %p137_p10, %s2410_s13, 1  ;;  %vm817_vm5 = vcmask 97344   ;;  %vm948_vm6 = vcmask 130144   ;;  %vm1767_vm7 = vcmask 1041408  }
  0x16   : > { %151 = vst.msk [vmem:[#allocation2 + $0x30] sm:$0xff] %vm143_vm0, %v2363_v0  ;;  %152 = vst.msk [vmem:[#allocation2 + $0x38] sm:$0xff] %vm143_vm0, %v2363_v0  ;;  %s2367_s29 = smov 16   ;;  %s2368_s30 = smov 20   ;;  %vm1083_vm8 = vcmask 162944   ;;  %vm1217_vm9 = vcmask 195744  }
  0x17   : > { %154 = vst.msk [vmem:[#allocation2 + $0x48] sm:$0xff] %vm143_vm0, %v2363_v0  ;;  %155 = vst.msk [vmem:[#allocation2 + $0x50] sm:$0xff] %vm143_vm0, %v2363_v0  ;;  %s2103_s22 = sshll.u32 %s138_s21, 7  ;;  %s2369_s3 = smov 24   ;;  %vm1348_vm10 = vcmask 228544   ;;  %vm1483_vm11 = vcmask 261344  }
  0x18   : > { %157 = vst.msk [vmem:[#allocation2 + $0x60] sm:$0xff] %vm143_vm0, %v2363_v0  ;;  %158 = vst.msk [vmem:[#allocation2 + $0x68] sm:$0xff] %vm143_vm0, %v2363_v0  ;;  %s2498_s25 = scalar_lea.vmem %s3900_s0, %s2103_s22  ;;  %s2370_s4 = smov 28   ;;  %vm1617_vm12 = vcmask 294144   ;;  %vm1718_vm13 = vcmask 293888  }
  0x19   : > { %160 = vst.msk [vmem:[#allocation2 + $0x78] sm:$0xff] %vm143_vm0, %v2363_v0  ;;  %161 = vst.msk [vmem:[#allocation2 + $0x80] sm:$0xff] %vm143_vm0, %v2363_v0  ;;  %v2106_v1 = vld [vmem:[%s2498_s25] sm:$0xff]   ;;  %v2169_v2 = vld [vmem:[%s2498_s25 + $0x8] sm:$0xff]   ;;  %s2371_s14 = smov 32   ;;  %s134_s21 = sand.u32 1, %s2353_s10  }
  0x1a   : > { %163 = vst.msk [vmem:[#allocation2 + $0x90] sm:$0xff] %vm143_vm0, %v2363_v0  ;;  %164 = vst.msk [vmem:[#allocation2 + $0x98] sm:$0xff] %vm143_vm0, %v2363_v0  ;;  %v2170_v3 = vld [vmem:[%s2498_s25 + $0x10] sm:$0xff]   ;;  %v2107_v4 = vunpack.c.l.bf16 %v2106_v1  ;;  %v2108_v5 = vunpack.c.h.bf16 %v2106_v1  ;;  %v2111_v6 = vunpack.c.l.bf16 %v2169_v2  ;;  %v2112_v7 = vunpack.c.h.bf16 %v2169_v2  ;;  %v2171_v8 = vld [vmem:[%s2498_s25 + $0x18] sm:$0xff]   ;;  %s2076_s22 = sshll.u32 %s134_s21, 8  ;;  %s2104_s24 = sshll.u32 %s2410_s13, 12 }
  0x1b   : > { %166 = vst.msk [vmem:[#allocation2 + $0xa8] sm:$0xff] %vm143_vm0, %v2363_v0  ;;  %167 = vst.msk [vmem:[#allocation2 + $0xb0] sm:$0xff] %vm143_vm0, %v2363_v0  ;;  %v2172_v9 = vld [vmem:[%s2498_s25 + $0x20] sm:$0xff]   ;;  %v2173_v10 = vld [vmem:[%s2498_s25 + $0x28] sm:$0xff]   ;;  %v2115_v14 = vunpack.c.l.bf16 %v2170_v3  ;;  %v2116_v15 = vunpack.c.h.bf16 %v2170_v3  ;;  %v2119_v16 = vunpack.c.l.bf16 %v2171_v8  ;;  %v2120_v17 = vunpack.c.h.bf16 %v2171_v8  ;;  %s3797_s23 = scalar_lea.vmem [#allocation4], %s2076_s22  ;;  %s3859_s13 = scalar_lea.sflag [#allocation5], %s134_s21 }
  0x1c   : > { %169 = vst.msk [vmem:[#allocation2 + $0xc0] sm:$0xff] %vm143_vm0, %v2363_v0  ;;  %170 = vst.msk [vmem:[#allocation2 + $0xc8] sm:$0xff] %vm143_vm0, %v2363_v0  ;;  %v2506_v11 = vld [vmem:[#allocation2] sm:$0xff]  ;;  %v2508_v12 = vld [vmem:[#allocation2 + $0x8] sm:$0xff]  ;;  %v2123_v21 = vunpack.c.l.bf16 %v2172_v9  ;;  %v2124_v25 = vunpack.c.h.bf16 %v2172_v9  ;;  %v2127_v26 = vunpack.c.l.bf16 %v2173_v10  ;;  %v2128_v27 = vunpack.c.h.bf16 %v2173_v10 }
  0x1d   : > { %172 = vst.msk [vmem:[#allocation2 + $0xd8] sm:$0xff] %vm143_vm0, %v2363_v0  ;;  %173 = vst.msk [vmem:[#allocation2 + $0xe0] sm:$0xff] %vm143_vm0, %v2363_v0  ;;  %v431_v18 = vrot.slane %v2506_v11, 1  ;;  %v432_v19 = vrot.slane %v2508_v12, 1  ;;  %v2174_v22 = vld [vmem:[%s2498_s25 + $0x30] sm:$0xff]   ;;  %v2175_v23 = vld [vmem:[%s2498_s25 + $0x38] sm:$0xff]  }
  0x1e   : > { %175 = vst.msk [vmem:[#allocation2 + $0xf0] sm:$0xff] %vm143_vm0, %v2363_v0  ;;  %176 = vst.msk [vmem:[#allocation2 + $0xf8] sm:$0xff] %vm143_vm0, %v2363_v0  ;;  %v2176_v24 = vld [vmem:[%s2498_s25 + $0x40] sm:$0xff]   ;;  %v2131_v28 = vunpack.c.l.bf16 %v2174_v22  ;;  %v2177_v29 = vld [vmem:[%s2498_s25 + $0x48] sm:$0xff]   ;;  %v2132_v34 = vunpack.c.h.bf16 %v2174_v22  ;;  %v2135_v35 = vunpack.c.l.bf16 %v2175_v23  ;;  %v2136_v38 = vunpack.c.h.bf16 %v2175_v23 }
  0x1f   : > { %178 = vst.msk [vmem:[#allocation2 + $0x108] sm:$0xff] %vm143_vm0, %v2363_v0  ;;  %179 = vst.msk [vmem:[#allocation2 + $0x110] sm:$0xff] %vm143_vm0, %v2363_v0  ;;  %v2178_v30 = vld [vmem:[%s2498_s25 + $0x50] sm:$0xff]   ;;  %v2179_v31 = vld [vmem:[%s2498_s25 + $0x58] sm:$0xff]   ;;  %v433_v32 = vsel %vm430_vm2, %v431_v18, %v432_v19  ;;  %v2139_v39 = vunpack.c.l.bf16 %v2176_v24  ;;  %v2140_v40 = vunpack.c.h.bf16 %v2176_v24  ;;  %v2143_v41 = vunpack.c.l.bf16 %v2177_v29 }
  0x20   : > { %181 = vst.msk [vmem:[#allocation2 + $0x120] sm:$0xff] %vm143_vm0, %v2363_v0  ;;  %182 = vst.msk [vmem:[#allocation2 + $0x128] sm:$0xff] %vm143_vm0, %v2363_v0  ;;  %v2180_v36 = vld [vmem:[%s2498_s25 + $0x60] sm:$0xff]   ;;  %v2181_v37 = vld [vmem:[%s2498_s25 + $0x68] sm:$0xff]   ;;  %511 = vrot.lane.b32.xlu0 %v433_v32, %s2364_s26  ;;  %v2144_v43 = vunpack.c.h.bf16 %v2177_v29  ;;  %v2147_v44 = vunpack.c.l.bf16 %v2178_v30  ;;  %v2148_v45 = vunpack.c.h.bf16 %v2178_v30  ;;  %v2151_v46 = vunpack.c.l.bf16 %v2179_v31 }
  0x21   : > { %184 = vst.msk [vmem:[#allocation2 + $0x138] sm:$0xff] %vm143_vm0, %v2363_v0  ;;  %185 = vst.msk [vmem:[#allocation2 + $0x140] sm:$0xff] %vm143_vm0, %v2363_v0  ;;  %v2182_v42 = vld [vmem:[%s2498_s25 + $0x70] sm:$0xff]   ;;  %v2152_v47 = vunpack.c.h.bf16 %v2179_v31  ;;  %v2155_v48 = vunpack.c.l.bf16 %v2180_v36  ;;  %v2156_v49 = vunpack.c.h.bf16 %v2180_v36  ;;  %v2159_v50 = vunpack.c.l.bf16 %v2181_v37 }
  0x22   : > { %187 = vst.msk [vmem:[#allocation2 + $0x150] sm:$0xff] %vm143_vm0, %v2363_v0  ;;  %188 = vst.msk [vmem:[#allocation2 + $0x158] sm:$0xff] %vm143_vm0, %v2363_v0  ;;  %v2160_v51 = vunpack.c.h.bf16 %v2181_v37  ;;  %v2163_v52 = vunpack.c.l.bf16 %v2182_v42  ;;  %v2164_v53 = vunpack.c.h.bf16 %v2182_v42  ;;  %v641_v54 = vrot.slane %v2506_v11, 2 }
  0x23   : > { %190 = vst.msk [vmem:[#allocation2 + $0x168] sm:$0xff] %vm143_vm0, %v2363_v0  ;;  %191 = vst.msk [vmem:[#allocation2 + $0x170] sm:$0xff] %vm143_vm0, %v2363_v0  ;;  %v642_v58 = vrot.slane %v2508_v12, 2 }
  0x24   : > { %193 = vst.msk [vmem:[#allocation2 + $0x180] sm:$0xff] %vm143_vm0, %v2363_v0  ;;  %194 = vst.msk [vmem:[#allocation2 + $0x188] sm:$0xff] %vm143_vm0, %v2363_v0 }
  0x25   : > { %196 = vst.msk [vmem:[#allocation2 + $0x198] sm:$0xff] %vm143_vm0, %v2363_v0  ;;  %197 = vst.msk [vmem:[#allocation2 + $0x1a0] sm:$0xff] %vm143_vm0, %v2363_v0 }
  0x26   : > { %147 = vst.msk [vmem:[#allocation2 + $0x10] sm:$0x3] %vm146_vm1, %v2363_v0  ;;  %150 = vst.msk [vmem:[#allocation2 + $0x28] sm:$0x3] %vm146_vm1, %v2363_v0 }
  0x27   : > { %153 = vst.msk [vmem:[#allocation2 + $0x40] sm:$0x3] %vm146_vm1, %v2363_v0  ;;  %156 = vst.msk [vmem:[#allocation2 + $0x58] sm:$0x3] %vm146_vm1, %v2363_v0 }
  0x28   : > { %159 = vst.msk [vmem:[#allocation2 + $0x70] sm:$0x3] %vm146_vm1, %v2363_v0  ;;  %162 = vst.msk [vmem:[#allocation2 + $0x88] sm:$0x3] %vm146_vm1, %v2363_v0 }
  0x29   : > { %165 = vst.msk [vmem:[#allocation2 + $0xa0] sm:$0x3] %vm146_vm1, %v2363_v0  ;;  %168 = vst.msk [vmem:[#allocation2 + $0xb8] sm:$0x3] %vm146_vm1, %v2363_v0 }
  0x2a   : > { %171 = vst.msk [vmem:[#allocation2 + $0xd0] sm:$0x3] %vm146_vm1, %v2363_v0  ;;  %174 = vst.msk [vmem:[#allocation2 + $0xe8] sm:$0x3] %vm146_vm1, %v2363_v0 }
  0x2b   : > { %177 = vst.msk [vmem:[#allocation2 + $0x100] sm:$0x3] %vm146_vm1, %v2363_v0  ;;  %180 = vst.msk [vmem:[#allocation2 + $0x118] sm:$0x3] %vm146_vm1, %v2363_v0 }
  0x2c   : > { %183 = vst.msk [vmem:[#allocation2 + $0x130] sm:$0x3] %vm146_vm1, %v2363_v0  ;;  %186 = vst.msk [vmem:[#allocation2 + $0x148] sm:$0x3] %vm146_vm1, %v2363_v0 }
  0x2d   : > { %189 = vst.msk [vmem:[#allocation2 + $0x160] sm:$0x3] %vm146_vm1, %v2363_v0  ;;  %192 = vst.msk [vmem:[#allocation2 + $0x178] sm:$0x3] %vm146_vm1, %v2363_v0  ;;  %v2510_v13 = vld [vmem:[#allocation2 + $0x10] sm:$0x3] }
  0x2e   : > { %195 = vst.msk [vmem:[#allocation2 + $0x190] sm:$0x3] %vm146_vm1, %v2363_v0  ;;  %198 = vst.msk [vmem:[#allocation2 + $0x1a8] sm:$0x3] %vm146_vm1, %v2363_v0  ;;  %v434_v20 = vrot.slane %v2510_v13, 1  ;;  %v644_v59 = vrot.slane %v2510_v13, 2 }
  0x2f   : > { %350 = vst.msk [vmem:[#allocation3] sm:$0xff] %vm143_vm0, %v2506_v11  ;;  %351 = vst.msk [vmem:[#allocation3 + $0x8] sm:$0xff] %vm143_vm0, %v2508_v12 }
  0x30   : > { %264 = vst.msk [vmem:[#allocation2 + $0x19] sm:$0xff] %vm143_vm0, %v2107_v4  ;;  %265 = vst.msk [vmem:[#allocation2 + $0x21] sm:$0xff] %vm143_vm0, %v2108_v5  ;;  %v435_v33 = vsel %vm430_vm2, %v432_v19, %v434_v20 }
  0x31   : > { %266 = vst.msk [vmem:[#allocation2 + $0x31] sm:$0xff] %vm143_vm0, %v2111_v6  ;;  %267 = vst.msk [vmem:[#allocation2 + $0x39] sm:$0xff] %vm143_vm0, %v2112_v7  ;;  %513 = vrot.lane.b32.xlu0 %v435_v33, %s2364_s26  ;;  %v2595_v6 = vsel %vm640_vm3, %v641_v54, %v642_v58  ;;  %v2598_v7 = vsel %vm640_vm3, %v642_v58, %v644_v59 }
  0x32   : > { %268 = vst.msk [vmem:[#allocation2 + $0x49] sm:$0xff] %vm143_vm0, %v2115_v14  ;;  %269 = vst.msk [vmem:[#allocation2 + $0x51] sm:$0xff] %vm143_vm0, %v2116_v15 }
  0x33   : > { %270 = vst.msk [vmem:[#allocation2 + $0x61] sm:$0xff] %vm143_vm0, %v2119_v16  ;;  %271 = vst.msk [vmem:[#allocation2 + $0x69] sm:$0xff] %vm143_vm0, %v2120_v17 }
  0x34   : > { %272 = vst.msk [vmem:[#allocation2 + $0x79] sm:$0xff] %vm143_vm0, %v2123_v21  ;;  %273 = vst.msk [vmem:[#allocation2 + $0x81] sm:$0xff] %vm143_vm0, %v2124_v25 }
  0x35   : > { %274 = vst.msk [vmem:[#allocation2 + $0x91] sm:$0xff] %vm143_vm0, %v2127_v26  ;;  %275 = vst.msk [vmem:[#allocation2 + $0x99] sm:$0xff] %vm143_vm0, %v2128_v27 }
  0x36   : > { %276 = vst.msk [vmem:[#allocation2 + $0xa9] sm:$0xff] %vm143_vm0, %v2131_v28  ;;  %277 = vst.msk [vmem:[#allocation2 + $0xb1] sm:$0xff] %vm143_vm0, %v2132_v34 }
  0x37   : > { %278 = vst.msk [vmem:[#allocation2 + $0xc1] sm:$0xff] %vm143_vm0, %v2135_v35  ;;  %279 = vst.msk [vmem:[#allocation2 + $0xc9] sm:$0xff] %vm143_vm0, %v2136_v38  ;;  %v2556_v55 = vld [vmem:[#allocation2 + $0x18] sm:$0xff]  ;;  %v2558_v56 = vld [vmem:[#allocation2 + $0x20] sm:$0xff] }
  0x38   : > { %280 = vst.msk [vmem:[#allocation2 + $0xd9] sm:$0xff] %vm143_vm0, %v2139_v39  ;;  %281 = vst.msk [vmem:[#allocation2 + $0xe1] sm:$0xff] %vm143_vm0, %v2140_v40  ;;  %v2560_v57 = vld [vmem:[#allocation2 + $0x30] sm:$0xff]  ;;  %v436_v60 = vrot.slane %v2556_v55, 1  ;;  %v437_v61 = vrot.slane %v2558_v56, 1  ;;  %v2574_v62 = vld [vmem:[#allocation2 + $0x38] sm:$0xff] }
  0x39   : > { %282 = vst.msk [vmem:[#allocation2 + $0xf1] sm:$0xff] %vm143_vm0, %v2143_v41  ;;  %283 = vst.msk [vmem:[#allocation2 + $0xf9] sm:$0xff] %vm143_vm0, %v2144_v43  ;;  %v441_v63 = vrot.slane %v2560_v57, 1  ;;  %v2579_v0 = vld [vmem:[#allocation2 + $0x28] sm:$0x3]  ;;  %v442_v1 = vrot.slane %v2574_v62, 1 }
  0x3a   : > { %284 = vst.msk [vmem:[#allocation2 + $0x109] sm:$0xff] %vm143_vm0, %v2147_v44  ;;  %285 = vst.msk [vmem:[#allocation2 + $0x111] sm:$0xff] %vm143_vm0, %v2148_v45  ;;  %v439_v2 = vrot.slane %v2579_v0, 1  ;;  %v2588_v3 = vld [vmem:[#allocation2 + $0x48] sm:$0xff]  ;;  %v2590_v4 = vld [vmem:[#allocation2 + $0x50] sm:$0xff]  ;;  %v2601_v8 = vsel %vm430_vm2, %v436_v60, %v437_v61 }
  0x3b   : > { %286 = vst.msk [vmem:[#allocation2 + $0x121] sm:$0xff] %vm143_vm0, %v2151_v46  ;;  %287 = vst.msk [vmem:[#allocation2 + $0x129] sm:$0xff] %vm143_vm0, %v2152_v47  ;;  %v2592_v5 = vld [vmem:[#allocation2 + $0x40] sm:$0x3]  ;;  %v446_v9 = vrot.slane %v2588_v3, 1  ;;  %v447_v10 = vrot.slane %v2590_v4, 1  ;;  %515 = vrot.lane.b32.xlu1 %v2601_v8, %s2364_s26  ;;  %v2618_v14 = vsel %vm430_vm2, %v441_v63, %v442_v1 }
  0x3c   : > { %288 = vst.msk [vmem:[#allocation2 + $0x139] sm:$0xff] %vm143_vm0, %v2155_v48  ;;  %289 = vst.msk [vmem:[#allocation2 + $0x141] sm:$0xff] %vm143_vm0, %v2156_v49  ;;  %v2609_v11 = vld [vmem:[#allocation2 + $0x60] sm:$0xff]  ;;  %v2611_v12 = vld [vmem:[#allocation2 + $0x68] sm:$0xff]  ;;  %519 = vrot.lane.b32.xlu0 %v2618_v14, %s2364_s26  ;;  %v2633_v17 = vsel %vm430_vm2, %v437_v61, %v439_v2  ;;  %v444_v18 = vrot.slane %v2592_v5, 1 }
  0x3d   : > { %290 = vst.msk [vmem:[#allocation2 + $0x151] sm:$0xff] %vm143_vm0, %v2159_v50  ;;  %352 = vst.msk [vmem:[#allocation3 + $0x10] sm:$0xff] %vm143_vm0, %v2556_v55  ;;  %v2613_v13 = vld [vmem:[#allocation2 + $0x78] sm:$0xff]  ;;  %v2624_v15 = vld [vmem:[#allocation2 + $0x80] sm:$0xff]  ;;  %v2645_v21 = vsel %vm430_vm2, %v446_v9, %v447_v10  ;;  %v451_v22 = vrot.slane %v2609_v11, 1  ;;  %v452_v23 = vrot.slane %v2611_v12, 1 }
  0x3e   : > { %353 = vst.msk [vmem:[#allocation3 + $0x18] sm:$0xff] %vm143_vm0, %v2558_v56  ;;  %354 = vst.msk [vmem:[#allocation3 + $0x20] sm:$0xff] %vm143_vm0, %v2560_v57  ;;  %v2628_v16 = vld [vmem:[#allocation2 + $0x90] sm:$0xff]  ;;  %v2638_v19 = vld [vmem:[#allocation2 + $0x98] sm:$0xff]  ;;  %v2672_v29 = vsel %vm430_vm2, %v442_v1, %v444_v18  ;;  %v456_v34 = vrot.slane %v2613_v13, 1  ;;  %v457_v35 = vrot.slane %v2624_v15, 1 }
  0x3f   : > { %291 = vst.msk [vmem:[#allocation2 + $0x159] sm:$0xff] %vm143_vm0, %v2160_v51  ;;  %292 = vst.msk [vmem:[#allocation2 + $0x169] sm:$0xff] %vm143_vm0, %v2163_v52  ;;  %v2642_v20 = vld [vmem:[#allocation2 + $0xa8] sm:$0xff]  ;;  %v2649_v24 = vld [vmem:[#allocation2 + $0x58] sm:$0x3]  ;;  %517 = vrot.lane.b32.xlu1 %v2633_v17, %s2364_s26  ;;  %v2684_v33 = vsel %vm430_vm2, %v451_v22, %v452_v23  ;;  %v461_v48 = vrot.slane %v2628_v16, 1 }
  0x40   : > { %293 = vst.msk [vmem:[#allocation2 + $0x171] sm:$0xff] %vm143_vm0, %v2164_v53  ;;  %355 = vst.msk [vmem:[#allocation3 + $0x28] sm:$0xff] %vm143_vm0, %v2574_v62  ;;  %v2653_v25 = vld [vmem:[#allocation2 + $0xb0] sm:$0xff]  ;;  %v2659_v26 = vld [vmem:[#allocation2 + $0xc0] sm:$0xff]  ;;  %523 = vrot.lane.b32.xlu0 %v2645_v21, %s2364_s26  ;;  %v449_v30 = vrot.slane %v2649_v24, 1  ;;  %v2731_v47 = vsel %vm430_vm2, %v456_v34, %v457_v35  ;;  %v462_v49 = vrot.slane %v2638_v19, 1 }
  0x41   : > { %356 = vst.msk [vmem:[#allocation3 + $0x30] sm:$0xff] %vm143_vm0, %v2588_v3  ;;  %357 = vst.msk [vmem:[#allocation3 + $0x38] sm:$0xff] %vm143_vm0, %v2590_v4  ;;  %v2663_v27 = vld [vmem:[#allocation2 + $0xc8] sm:$0xff]  ;;  %v2667_v28 = vld [vmem:[#allocation2 + $0xd8] sm:$0xff]  ;;  %v466_v60 = vrot.slane %v2642_v20, 1  ;;  %v467_v61 = vrot.slane %v2653_v25, 1 }
  0x42   : > { %358 = vst.msk [vmem:[#allocation3 + $0x40] sm:$0xff] %vm143_vm0, %v2609_v11  ;;  %359 = vst.msk [vmem:[#allocation3 + $0x48] sm:$0xff] %vm143_vm0, %v2611_v12  ;;  %v2677_v31 = vld [vmem:[#allocation2 + $0xe0] sm:$0xff]  ;;  %v2681_v32 = vld [vmem:[#allocation2 + $0xf0] sm:$0xff]  ;;  %v2717_v43 = vsel %vm430_vm2, %v447_v10, %v449_v30  ;;  %v2762_v59 = vsel %vm430_vm2, %v461_v48, %v462_v49  ;;  %v471_v10 = vrot.slane %v2659_v26, 1  ;;  %v472_v18 = vrot.slane %v2663_v27, 1 }
  0x43   : > { %360 = vst.msk [vmem:[#allocation3 + $0x50] sm:$0xff] %vm143_vm0, %v2613_v13  ;;  %361 = vst.msk [vmem:[#allocation3 + $0x58] sm:$0xff] %vm143_vm0, %v2624_v15  ;;  %v2688_v36 = vld [vmem:[#allocation2 + $0x70] sm:$0x3]  ;;  %v2692_v37 = vld [vmem:[#allocation2 + $0xf8] sm:$0xff]  ;;  %521 = vrot.lane.b32.xlu1 %v2672_v29, %s2364_s26  ;;  %v2777_v9 = vsel %vm430_vm2, %v466_v60, %v467_v61 }
  0x44   : > { %362 = vst.msk [vmem:[#allocation3 + $0x60] sm:$0xff] %vm143_vm0, %v2628_v16  ;;  %363 = vst.msk [vmem:[#allocation3 + $0x68] sm:$0xff] %vm143_vm0, %v2638_v19  ;;  %v2696_v38 = vld [vmem:[#allocation2 + $0x108] sm:$0xff]  ;;  %v2700_v39 = vld [vmem:[#allocation2 + $0x110] sm:$0xff]  ;;  %527 = vrot.lane.b32.xlu0 %v2684_v33, %s2364_s26  ;;  %v454_v44 = vrot.slane %v2688_v36, 1  ;;  %v2792_v34 = vsel %vm430_vm2, %v471_v10, %v472_v18  ;;  %v482_v10 = vrot.slane %v2692_v37, 1 }
  0x45   : > { %364 = vst.msk [vmem:[#allocation3 + $0x70] sm:$0xff] %vm143_vm0, %v2642_v20  ;;  %365 = vst.msk [vmem:[#allocation3 + $0x78] sm:$0xff] %vm143_vm0, %v2653_v25  ;;  %v2708_v40 = vld [vmem:[#allocation2 + $0x120] sm:$0xff]  ;;  %v2710_v41 = vld [vmem:[#allocation2 + $0x128] sm:$0xff] }
  0x46   : > { %3979 = vst [vmem:[#allocation7_spill] sm:$0xff] %v2659_v26  ;;  %3980 = vst [vmem:[#allocation8_spill] sm:$0xff] %v2663_v27  ;;  %v2712_v42 = vld [vmem:[#allocation2 + $0x138] sm:$0xff]  ;;  %v2724_v45 = vld [vmem:[#allocation2 + $0x140] sm:$0xff]  ;;  %v2758_v54 = vsel %vm430_vm2, %v452_v23, %v454_v44  ;;  %v477_v44 = vrot.slane %v2677_v31, 1 }
  0x47   : > { %366 = vst.msk [vmem:[#allocation3 + $0x80] sm:$0xff] %vm143_vm0, %v2659_v26  ;;  %3981 = vst [vmem:[#allocation9_spill] sm:$0xff] %v2667_v28  ;;  %v2728_v46 = vld [vmem:[#allocation2 + $0x150] sm:$0xff]  ;;  %v2735_v50 = vld [vmem:[#allocation2 + $0x88] sm:$0x3]  ;;  %525 = vrot.lane.b32.xlu1 %v2717_v43, %s2364_s26 }
  0x48   : > { %3982 = vst [vmem:[#allocation10_spill] sm:$0xff] %v2672_v29  ;;  %367 = vst.msk [vmem:[#allocation3 + $0x88] sm:$0xff] %vm143_vm0, %v2663_v27  ;;  %v2739_v51 = vld [vmem:[#allocation2 + $0x158] sm:$0xff]  ;;  %v2743_v52 = vld [vmem:[#allocation2 + $0x168] sm:$0xff]  ;;  %531 = vrot.lane.b32.xlu0 %v2731_v47, %s2364_s26  ;;  %v459_v58 = vrot.slane %v2735_v50, 1 }
  0x49   : > { %3983 = vst [vmem:[#allocation11_spill] sm:$0xff] %v2677_v31  ;;  %368 = vst.msk [vmem:[#allocation3 + $0x90] sm:$0xff] %vm143_vm0, %v2667_v28  ;;  %v2747_v53 = vld [vmem:[#allocation2 + $0x170] sm:$0xff]  ;;  %v2766_v63 = vld [vmem:[#allocation2 + $0xa0] sm:$0x3] }
  0x4a   : > { %3984 = vst [vmem:[#allocation12_spill] sm:$0xff] %v2684_v33  ;;  %369 = vst.msk [vmem:[#allocation3 + $0x98] sm:$0xff] %vm143_vm0, %v2677_v31  ;;  %v2773_v1 = vsel %vm430_vm2, %v457_v35, %v459_v58  ;;  %v464_v2 = vrot.slane %v2766_v63, 1  ;;  %v2781_v22 = vld [vmem:[#allocation2 + $0xb8] sm:$0x3]  ;;  %v476_v35 = vrot.slane %v2667_v28, 1 }
  0x4b   : > { %370 = vst.msk [vmem:[#allocation3 + $0xa0] sm:$0xff] %vm143_vm0, %v2681_v32  ;;  %371 = vst.msk [vmem:[#allocation3 + $0xa8] sm:$0xff] %vm143_vm0, %v2692_v37  ;;  %529 = vrot.lane.b32.xlu1 %v2758_v54, %s2364_s26  ;;  %v469_v30 = vrot.slane %v2781_v22, 1  ;;  %v2796_v48 = vld [vmem:[#allocation2 + $0xd0] sm:$0x3] }
  0x4c   : > { %372 = vst.msk [vmem:[#allocation3 + $0xb0] sm:$0xff] %vm143_vm0, %v2696_v38  ;;  %373 = vst.msk [vmem:[#allocation3 + $0xb8] sm:$0xff] %vm143_vm0, %v2700_v39  ;;  %535 = vrot.lane.b32.xlu0 %v2762_v59, %s2364_s26  ;;  %v2788_v23 = vsel %vm430_vm2, %v462_v49, %v464_v2  ;;  %v474_v58 = vrot.slane %v2796_v48, 1  ;;  %v2807_v60 = vsel %vm430_vm2, %v476_v35, %v477_v44  ;;  %v481_v2 = vrot.slane %v2681_v32, 1  ;;  %v2887_v33 = vld [vmem:[#allocation2 + $0x160] sm:$0x3] }
  0x4d   : > { %3985 = vst [vmem:[#allocation13_spill] sm:$0xff] %v2717_v43  ;;  %374 = vst.msk [vmem:[#allocation3 + $0xc0] sm:$0xff] %vm143_vm0, %v2708_v40  ;;  %v2803_v49 = vsel %vm430_vm2, %v467_v61, %v469_v30  ;;  %v507_v43 = vrot.slane %v2747_v53, 1 }
  0x4e   : > { %375 = vst.msk [vmem:[#allocation3 + $0xc8] sm:$0xff] %vm143_vm0, %v2710_v41  ;;  %376 = vst.msk [vmem:[#allocation3 + $0xd0] sm:$0xff] %vm143_vm0, %v2712_v42  ;;  %v2818_v61 = vsel %vm430_vm2, %v472_v18, %v474_v58  ;;  %v2822_v35 = vsel %vm430_vm2, %v481_v2, %v482_v10 }
  0x4f   : > { %3986 = vst [vmem:[#allocation14_spill] sm:$0xff] %v2731_v47  ;;  %377 = vst.msk [vmem:[#allocation3 + $0xd8] sm:$0xff] %vm143_vm0, %v2724_v45  ;;  %533 = vrot.lane.b32.xlu1 %v2773_v1, %s2364_s26  ;;  %v2871_v47 = vld [vmem:[#allocation2 + $0x148] sm:$0x3] }
  0x50   : > { %378 = vst.msk [vmem:[#allocation3 + $0xe0] sm:$0xff] %vm143_vm0, %v2728_v46  ;;  %379 = vst.msk [vmem:[#allocation3 + $0xe8] sm:$0xff] %vm143_vm0, %v2739_v51  ;;  %539 = vrot.lane.b32.xlu0 %v2777_v9, %s2364_s26 }
  0x51   : > { %380 = vst.msk [vmem:[#allocation3 + $0xf0] sm:$0xff] %vm143_vm0, %v2743_v52  ;;  %381 = vst.msk [vmem:[#allocation3 + $0xf8] sm:$0xff] %vm143_vm0, %v2747_v53 }
  0x52   : > { %3987 = vst [vmem:[#allocation15_spill] sm:$0xff] %v2758_v54  ;;  %3988 = vst [vmem:[#allocation16_spill] sm:$0xff] %v2762_v59  ;;  %v2841_v59 = vld [vmem:[#allocation2 + $0x118] sm:$0x3]  ;;  %v2856_v54 = vld [vmem:[#allocation2 + $0x130] sm:$0x3] }
  0x53   : > { %3989 = vst [vmem:[#allocation17_spill] sm:$0xff] %v2773_v1  ;;  %3990 = vst [vmem:[#allocation18_spill] sm:$0xff] %v2777_v9  ;;  %537 = vrot.lane.b32.xlu1 %v2788_v23, %s2364_s26  ;;  %v2811_v9 = vld [vmem:[#allocation2 + $0xe8] sm:$0x3]  ;;  %v2826_v1 = vld [vmem:[#allocation2 + $0x100] sm:$0x3] }
  0x54   : > { %3991 = vst [vmem:[#allocation19_spill] sm:$0xff] %v2788_v23  ;;  %3992 = vst [vmem:[#allocation20_spill] sm:$0xff] %v2792_v34  ;;  %543 = vrot.lane.b32.xlu0 %v2792_v34, %s2364_s26  ;;  %v479_v30 = vrot.slane %v2811_v9, 1  ;;  %v486_v34 = vrot.slane %v2696_v38, 1  ;;  %v487_v23 = vrot.slane %v2700_v39, 1  ;;  %v484_v58 = vrot.slane %v2826_v1, 1 }
  0x55   : > { %3993 = vst [vmem:[#allocation21_spill] sm:$0xff] %v2803_v49  ;;  %3994 = vst [vmem:[#allocation22_spill] sm:$0xff] %v2807_v60 }
  0x56   : > { %3995 = vst [vmem:[#allocation23_spill] sm:$0xff] %v2818_v61  ;;  %3996 = vst [vmem:[#allocation24_spill] sm:$0xff] %v2822_v35  ;;  %v2833_v18 = vsel %vm430_vm2, %v477_v44, %v479_v30  ;;  %v2837_v2 = vsel %vm430_vm2, %v486_v34, %v487_v23  ;;  %v2848_v44 = vsel %vm430_vm2, %v482_v10, %v484_v58  ;;  %v489_v30 = vrot.slane %v2841_v59, 1 }
  0x57   : > { %541 = vrot.lane.b32.xlu1 %v2803_v49, %s2364_s26  ;;  %3997 = vst [vmem:[#allocation25_spill] sm:$0xff] %v2833_v18  ;;  %3998 = vst [vmem:[#allocation26_spill] sm:$0xff] %v2837_v2  ;;  %v491_v49 = vrot.slane %v2708_v40, 1  ;;  %v494_v58 = vrot.slane %v2856_v54, 1 }
  0x58   : > { %547 = vrot.lane.b32.xlu0 %v2807_v60, %s2364_s26  ;;  %v492_v60 = vrot.slane %v2710_v41, 1  ;;  %3999 = vst [vmem:[#allocation27_spill] sm:$0xff] %v2848_v44  ;;  %v2863_v10 = vsel %vm430_vm2, %v487_v23, %v489_v30  ;;  %v499_v30 = vrot.slane %v2871_v47, 1 }
  0x59   : > { %4001 = vst [vmem:[#allocation29_spill] sm:$0xff] %v2863_v10 }
  0x5a   : > { %v2852_v34 = vsel %vm430_vm2, %v491_v49, %v492_v60  ;;  %v2878_v23 = vsel %vm430_vm2, %v492_v60, %v494_v58 }
  0x5b   : > { %545 = vrot.lane.b32.xlu1 %v2818_v61, %s2364_s26  ;;  %4000 = vst [vmem:[#allocation28_spill] sm:$0xff] %v2852_v34  ;;  %v496_v61 = vrot.slane %v2712_v42, 1 }
  0x5c   : > { %551 = vrot.lane.b32.xlu0 %v2822_v35, %s2364_s26  ;;  %v497_v35 = vrot.slane %v2724_v45, 1 }
  0x5e   : > { %v2867_v49 = vsel %vm430_vm2, %v496_v61, %v497_v35  ;;  %v2895_v60 = vsel %vm430_vm2, %v497_v35, %v499_v30  ;;  %v646_v30 = vrot.slane %v2556_v55, 2 }
  0x5f   : > { %549 = vrot.lane.b32.xlu1 %v2833_v18, %s2364_s26  ;;  %4002 = vst [vmem:[#allocation30_spill] sm:$0xff] %v2867_v49  ;;  %v502_v18 = vrot.slane %v2739_v51, 1  ;;  %4004 = vst [vmem:[#allocation32_spill] sm:$0xff] %v2895_v60 }
  0x60   : > { %555 = vrot.lane.b32.xlu0 %v2837_v2, %s2364_s26  ;;  %v501_v2 = vrot.slane %v2728_v46, 1 }
  0x62   : > { %v2883_v61 = vsel %vm430_vm2, %v501_v2, %v502_v18  ;;  %v504_v2 = vrot.slane %v2887_v33, 1 }
  0x63   : > { %553 = vrot.lane.b32.xlu1 %v2848_v44, %s2364_s26  ;;  %4003 = vst [vmem:[#allocation31_spill] sm:$0xff] %v2883_v61  ;;  %v506_v44 = vrot.slane %v2743_v52, 1 }
  0x64   : > { %559 = vrot.lane.b32.xlu0 %v2852_v34, %s2364_s26  ;;  %v2183_v34 = vld [vmem:[%s2498_s25 + $0x78] sm:$0xff]   ;;  %s2010_s25 = sshll.u32 %s3797_s23, 4  ;;  %s3854_s25 = int_to_ptr.vmem [resolvable:$true] %s2010_s25 }
  0x65   : > { %v2167_v29 = vunpack.c.l.bf16 %v2183_v34  ;;  %v2899_v58 = vsel %vm430_vm2, %v506_v44, %v507_v43  ;;  %v647_v44 = vrot.slane %v2558_v56, 2 }
  0x66   : > { %4005 = vst [vmem:[#allocation33_spill] sm:$0xff] %v2899_v58 }
  0x67   : > { %557 = vrot.lane.b32.xlu1 %v2863_v10, %s2364_s26  ;;  %294 = vst.msk [vmem:[#allocation2 + $0x181] sm:$0xff] %vm143_vm0, %v2167_v29  ;;  %v2168_v10 = vunpack.c.h.bf16 %v2183_v34  ;;  %v2909_v29 = vsel %vm430_vm2, %v502_v18, %v504_v2  ;;  %v651_v18 = vrot.slane %v2560_v57, 2  ;;  %v652_v2 = vrot.slane %v2574_v62, 2 }
  0x68   : > { %563 = vrot.lane.b32.xlu0 %v2867_v49, %s2364_s26  ;;  %v2901_v49 = vld [vmem:[#allocation2 + $0x178] sm:$0x3]  ;;  %4006 = vst [vmem:[#allocation34_spill] sm:$0xff] %v2909_v29 }
  0x69   : > { %295 = vst.msk [vmem:[#allocation2 + $0x189] sm:$0xff] %vm143_vm0, %v2168_v10  ;;  %v509_v35 = vrot.slane %v2901_v49, 1  ;;  %v2922_v10 = vsel %vm640_vm3, %v646_v30, %v647_v44 }
  0x6b   : > { %561 = vrot.lane.b32.xlu1 %v2878_v23, %s2364_s26  ;;  %v2919_v34 = vsel %vm430_vm2, %v507_v43, %v509_v35  ;;  %v656_v43 = vrot.slane %v2588_v3, 2  ;;  %v657_v35 = vrot.slane %v2590_v4, 2 }
  0x6c   : > { %567 = vrot.lane.b32.xlu0 %v2883_v61, %s2364_s26  ;;  %4007 = vst [vmem:[#allocation35_spill] sm:$0xff] %v2919_v34 }
  0x6f   : > { %565 = vrot.lane.b32.xlu1 %v2895_v60, %s2364_s26 }
  0x70   : > { %571 = vrot.lane.b32.xlu0 %v2899_v58, %s2364_s26  ;;  %v649_v58 = vrot.slane %v2579_v0, 2  ;;  %v2945_v0 = vsel %vm640_vm3, %v656_v43, %v657_v35  ;;  %v667_v43 = vrot.slane %v2624_v15, 2 }
  0x72   : > { %v2941_v30 = vsel %vm640_vm3, %v647_v44, %v649_v58  ;;  %v659_v58 = vrot.slane %v2649_v24, 2  ;;  %v666_v44 = vrot.slane %v2613_v13, 2 }
  0x73   : > { %569 = vrot.lane.b32.xlu1 %v2909_v29, %s2364_s26  ;;  %v662_v29 = vrot.slane %v2611_v12, 2 }
  0x74   : > { %721 = vrot.lane.b32.xlu0 %v2595_v6, %s2365_s27  ;;  %v2932_v6 = vsel %vm640_vm3, %v651_v18, %v652_v2  ;;  %v661_v18 = vrot.slane %v2609_v11, 2  ;;  %v2967_v61 = vsel %vm640_vm3, %v657_v35, %v659_v58  ;;  %v2971_v24 = vsel %vm640_vm3, %v666_v44, %v667_v43 }
  0x75   : > { %4009 = vst [vmem:[#allocation37_spill] sm:$0xff] %v2971_v24  ;;  %v669_v35 = vrot.slane %v2735_v50, 2  ;;  %v676_v58 = vrot.slane %v2642_v20, 2  ;;  %v677_v44 = vrot.slane %v2653_v25, 2 }
  0x77   : > { %573 = vrot.lane.b32.xlu1 %v2919_v34, %s2364_s26  ;;  %v654_v34 = vrot.slane %v2592_v5, 2  ;;  %v2958_v5 = vsel %vm640_vm3, %v661_v18, %v662_v29  ;;  %v672_v18 = vrot.slane %v2638_v19, 2  ;;  %v2997_v50 = vsel %vm640_vm3, %v676_v58, %v677_v44 }
  0x78   : > { %725 = vrot.lane.b32.xlu0 %v2922_v10, %s2365_s27  ;;  %4008 = vst [vmem:[#allocation36_spill] sm:$0xff] %v2958_v5  ;;  %4012 = vst [vmem:[#allocation40_spill] sm:$0xff] %v2997_v50  ;;  %v687_v58 = vrot.slane %v2677_v31, 2 }
  0x7b   : > { %723 = vrot.lane.b32.xlu1 %v2598_v7, %s2365_s27  ;;  %v2954_v7 = vsel %vm640_vm3, %v652_v2, %v654_v34  ;;  %v664_v34 = vrot.slane %v2688_v36, 2  ;;  %v671_v2 = vrot.slane %v2628_v16, 2 }
  0x7c   : > { %729 = vrot.lane.b32.xlu0 %v2932_v6, %s2365_s27 }
  0x7d   : > { %v2980_v60 = vsel %vm640_vm3, %v662_v29, %v664_v34  ;;  %v2984_v36 = vsel %vm640_vm3, %v671_v2, %v672_v18  ;;  %v674_v29 = vrot.slane %v2766_v63, 2  ;;  %v681_v34 = vrot.slane %v2659_v26, 2 }
  0x7e   : > { %4010 = vst [vmem:[#allocation38_spill] sm:$0xff] %v2984_v36  ;;  %v682_v2 = vrot.slane %v2663_v27, 2 }
  0x7f   : > { %727 = vrot.lane.b32.xlu1 %v2941_v30, %s2365_s27 }
  0x80   : > { %733 = vrot.lane.b32.xlu0 %v2945_v0, %s2365_s27  ;;  %v3010_v63 = vsel %vm640_vm3, %v681_v34, %v682_v2  ;;  %v692_v34 = vrot.slane %v2692_v37, 2 }
  0x81   : > { %4014 = vst [vmem:[#allocation42_spill] sm:$0xff] %v3010_v63 }
  0x83   : > { %731 = vrot.lane.b32.xlu1 %v2954_v7, %s2365_s27 }
  0x84   : > { %737 = vrot.lane.b32.xlu0 %v2958_v5, %s2365_s27  ;;  %v717_v5 = vrot.slane %v2747_v53, 2 }
  0x87   : > { %735 = vrot.lane.b32.xlu1 %v2967_v61, %s2365_s27 }
  0x88   : > { %741 = vrot.lane.b32.xlu0 %v2971_v24, %s2365_s27  ;;  %v2993_v24 = vsel %vm640_vm3, %v667_v43, %v669_v35  ;;  %v679_v43 = vrot.slane %v2781_v22, 2  ;;  %v686_v35 = vrot.slane %v2667_v28, 2 }
  0x89   : > { %4011 = vst [vmem:[#allocation39_spill] sm:$0xff] %v2993_v24 }
  0x8a   : > { %v3023_v22 = vsel %vm640_vm3, %v686_v35, %v687_v58  ;;  %v697_v35 = vrot.slane %v2700_v39, 2 }
  0x8b   : > { %739 = vrot.lane.b32.xlu1 %v2980_v60, %s2365_s27 }
  0x8c   : > { %745 = vrot.lane.b32.xlu0 %v2984_v36, %s2365_s27  ;;  %v3006_v36 = vsel %vm640_vm3, %v672_v18, %v674_v29  ;;  %v684_v18 = vrot.slane %v2796_v48, 2  ;;  %v691_v29 = vrot.slane %v2681_v32, 2 }
  0x8d   : > { %4013 = vst [vmem:[#allocation41_spill] sm:$0xff] %v3006_v36 }
  0x8e   : > { %v3036_v48 = vsel %vm640_vm3, %v691_v29, %v692_v34  ;;  %v702_v29 = vrot.slane %v2710_v41, 2 }
  0x8f   : > { %743 = vrot.lane.b32.xlu1 %v2993_v24, %s2365_s27  ;;  %v712_v24 = vrot.slane %v2739_v51, 2 }
  0x90   : > { %749 = vrot.lane.b32.xlu0 %v2997_v50, %s2365_s27  ;;  %v3019_v50 = vsel %vm640_vm3, %v677_v44, %v679_v43  ;;  %v689_v44 = vrot.slane %v2811_v9, 2  ;;  %v696_v43 = vrot.slane %v2696_v38, 2 }
  0x91   : > { %4015 = vst [vmem:[#allocation43_spill] sm:$0xff] %v3019_v50 }
  0x92   : > { %v3049_v9 = vsel %vm640_vm3, %v696_v43, %v697_v35  ;;  %v707_v43 = vrot.slane %v2724_v45, 2 }
  0x93   : > { %747 = vrot.lane.b32.xlu1 %v3006_v36, %s2365_s27 }
  0x94   : > { %753 = vrot.lane.b32.xlu0 %v3010_v63, %s2365_s27  ;;  %v3032_v63 = vsel %vm640_vm3, %v682_v2, %v684_v18  ;;  %v694_v2 = vrot.slane %v2826_v1, 2  ;;  %v701_v18 = vrot.slane %v2708_v40, 2 }
  0x95   : > { %4016 = vst [vmem:[#allocation44_spill] sm:$0xff] %v3032_v63 }
  0x96   : > { %v3062_v1 = vsel %vm640_vm3, %v701_v18, %v702_v29  ;;  %v711_v18 = vrot.slane %v2728_v46, 2 }
  0x97   : > { %751 = vrot.lane.b32.xlu1 %v3019_v50, %s2365_s27  ;;  %v3045_v50 = vsel %vm640_vm3, %v687_v58, %v689_v44  ;;  %v699_v58 = vrot.slane %v2841_v59, 2  ;;  %4017 = vst [vmem:[#allocation45_spill] sm:$0xff] %v3062_v1  ;;  %v706_v44 = vrot.slane %v2712_v42, 2  ;;  %v512_v59 = vpop.permute.xlu0 %511 }
  0x98   : > { %757 = vrot.lane.b32.xlu0 %v3023_v22, %s2365_s27  ;;  %608 = vst.msk [vmem:[#allocation3] sm:$0xff] %vm607_vm4, %v512_v59 }
  0x99   : > { %v3071_v36 = vsel %vm640_vm3, %v697_v35, %v699_v58 }
  0x9b   : > { %755 = vrot.lane.b32.xlu1 %v3032_v63, %s2365_s27  ;;  %v3058_v63 = vsel %vm640_vm3, %v692_v34, %v694_v2  ;;  %v704_v34 = vrot.slane %v2856_v54, 2  ;;  %v3075_v2 = vsel %vm640_vm3, %v706_v44, %v707_v43  ;;  %v709_v54 = vrot.slane %v2871_v47, 2 }
  0x9c   : > { %761 = vrot.lane.b32.xlu0 %v3036_v48, %s2365_s27  ;;  %v3089_v44 = vsel %vm640_vm3, %v711_v18, %v712_v24  ;;  %v714_v47 = vrot.slane %v2887_v33, 2  ;;  %v719_v33 = vrot.slane %v2901_v49, 2 }
  0x9d   : > { %v3085_v35 = vsel %vm640_vm3, %v702_v29, %v704_v34  ;;  %v3099_v29 = vsel %vm640_vm3, %v707_v43, %v709_v54 }
  0x9e   : > { %v3112_v43 = vsel %vm640_vm3, %v712_v24, %v714_v47 }
  0x9f   : > { %759 = vrot.lane.b32.xlu1 %v3045_v50, %s2365_s27 }
  0xa0   : > { %765 = vrot.lane.b32.xlu0 %v3049_v9, %s2365_s27 }
  0xa3   : > { %763 = vrot.lane.b32.xlu1 %v3058_v63, %s2365_s27  ;;  %v514_v58 = vpop.permute.xlu0 %513 }
  0xa4   : > { %769 = vrot.lane.b32.xlu0 %v3062_v1, %s2365_s27  ;;  %v716_v1 = vrot.slane %v2743_v52, 2  ;;  %609 = vst.msk [vmem:[#allocation3 + $0x8] sm:$0xff] %vm607_vm4, %v514_v58  ;;  %v3122_v58 = vsel %vm640_vm3, %v717_v5, %v719_v33 }
  0xa6   : > { %v3103_v59 = vsel %vm640_vm3, %v716_v1, %v717_v5 }
  0xa7   : > { %767 = vrot.lane.b32.xlu1 %v3071_v36, %s2365_s27 }
  0xa8   : > { %773 = vrot.lane.b32.xlu0 %v3075_v2, %s2365_s27 }
  0xab   : > { %771 = vrot.lane.b32.xlu1 %v3085_v35, %s2365_s27 }
  0xac   : > { %777 = vrot.lane.b32.xlu0 %v3089_v44, %s2365_s27 }
  0xad   : > { %v516_v34 = vpop.permute.xlu1 %515 }
  0xae   : > { %610 = vst.msk [vmem:[#allocation3 + $0x10] sm:$0xff] %vm607_vm4, %v516_v34  ;;  %v520_v18 = vpop.permute.xlu0 %519 }
  0xaf   : > { %775 = vrot.lane.b32.xlu1 %v3099_v29, %s2365_s27  ;;  %612 = vst.msk [vmem:[#allocation3 + $0x20] sm:$0xff] %vm607_vm4, %v520_v18 }
  0xb0   : > { %781 = vrot.lane.b32.xlu0 %v3103_v59, %s2365_s27 }
  0xb1   : > { %v518_v54 = vpop.permute.xlu1 %517 }
  0xb2   : > { %611 = vst.msk [vmem:[#allocation3 + $0x18] sm:$0xff] %vm607_vm4, %v518_v54  ;;  %v524_v1 = vpop.permute.xlu0 %523 }
  0xb3   : > { %779 = vrot.lane.b32.xlu1 %v3112_v43, %s2365_s27  ;;  %614 = vst.msk [vmem:[#allocation3 + $0x30] sm:$0xff] %vm607_vm4, %v524_v1 }
  0xb4   : > { %852 = vrot.lane.b32.xlu0 %v2556_v55, %s2366_s28 }
  0xb5   : > { %v522_v24 = vpop.permute.xlu1 %521 }
  0xb6   : > { %613 = vst.msk [vmem:[#allocation3 + $0x28] sm:$0xff] %vm607_vm4, %v522_v24  ;;  %v528_v49 = vpop.permute.xlu0 %527 }
  0xb7   : > { %783 = vrot.lane.b32.xlu1 %v3122_v58, %s2365_s27  ;;  %616 = vst.msk [vmem:[#allocation3 + $0x40] sm:$0xff] %vm607_vm4, %v528_v49 }
  0xb8   : > { %856 = vrot.lane.b32.xlu0 %v2560_v57, %s2366_s28 }
  0xb9   : > { %v526_v47 = vpop.permute.xlu1 %525 }
  0xba   : > { %615 = vst.msk [vmem:[#allocation3 + $0x38] sm:$0xff] %vm607_vm4, %v526_v47  ;;  %v532_v34 = vpop.permute.xlu0 %531 }
  0xbb   : > { %854 = vrot.lane.b32.xlu1 %v2558_v56, %s2366_s28  ;;  %618 = vst.msk [vmem:[#allocation3 + $0x50] sm:$0xff] %vm607_vm4, %v532_v34 }
  0xbc   : > { %860 = vrot.lane.b32.xlu0 %v2588_v3, %s2366_s28 }
  0xbd   : > { %v530_v55 = vpop.permute.xlu1 %529 }
  0xbe   : > { %617 = vst.msk [vmem:[#allocation3 + $0x48] sm:$0xff] %vm607_vm4, %v530_v55  ;;  %v536_v5 = vpop.permute.xlu0 %535 }
  0xbf   : > { %858 = vrot.lane.b32.xlu1 %v2574_v62, %s2366_s28  ;;  %620 = vst.msk [vmem:[#allocation3 + $0x60] sm:$0xff] %vm607_vm4, %v536_v5 }
  0xc0   : > { %864 = vrot.lane.b32.xlu0 %v2609_v11, %s2366_s28 }
  0xc1   : > { %v534_v18 = vpop.permute.xlu1 %533 }
  0xc2   : > { %619 = vst.msk [vmem:[#allocation3 + $0x58] sm:$0xff] %vm607_vm4, %v534_v18  ;;  %v540_v56 = vpop.permute.xlu0 %539 }
  0xc3   : > { %862 = vrot.lane.b32.xlu1 %v2590_v4, %s2366_s28  ;;  %622 = vst.msk [vmem:[#allocation3 + $0x70] sm:$0xff] %vm607_vm4, %v540_v56 }
  0xc4   : > { %868 = vrot.lane.b32.xlu0 %v2613_v13, %s2366_s28 }
  0xc5   : > { %v538_v33 = vpop.permute.xlu1 %537 }
  0xc6   : > { %621 = vst.msk [vmem:[#allocation3 + $0x68] sm:$0xff] %vm607_vm4, %v538_v33  ;;  %v544_v54 = vpop.permute.xlu0 %543 }
  0xc7   : > { %866 = vrot.lane.b32.xlu1 %v2611_v12, %s2366_s28  ;;  %624 = vst.msk [vmem:[#allocation3 + $0x80] sm:$0xff] %vm607_vm4, %v544_v54 }
  0xc8   : > { %872 = vrot.lane.b32.xlu0 %v2628_v16, %s2366_s28 }
  0xc9   : > { %v542_v1 = vpop.permute.xlu1 %541 }
  0xca   : > { %623 = vst.msk [vmem:[#allocation3 + $0x78] sm:$0xff] %vm607_vm4, %v542_v1  ;;  %v548_v24 = vpop.permute.xlu0 %547 }
  0xcb   : > { %870 = vrot.lane.b32.xlu1 %v2624_v15, %s2366_s28  ;;  %626 = vst.msk [vmem:[#allocation3 + $0x90] sm:$0xff] %vm607_vm4, %v548_v24 }
  0xcc   : > { %876 = vrot.lane.b32.xlu0 %v2642_v20, %s2366_s28 }
  0xcd   : > { %v546_v49 = vpop.permute.xlu1 %545 }
  0xce   : > { %625 = vst.msk [vmem:[#allocation3 + $0x88] sm:$0xff] %vm607_vm4, %v546_v49  ;;  %v552_v47 = vpop.permute.xlu0 %551 }
  0xcf   : > { %874 = vrot.lane.b32.xlu1 %v2638_v19, %s2366_s28  ;;  %628 = vst.msk [vmem:[#allocation3 + $0xa0] sm:$0xff] %vm607_vm4, %v552_v47 }
  0xd0   : > { %880 = vrot.lane.b32.xlu0 %v2659_v26, %s2366_s28 }
  0xd1   : > { %v550_v34 = vpop.permute.xlu1 %549 }
  0xd2   : > { %627 = vst.msk [vmem:[#allocation3 + $0x98] sm:$0xff] %vm607_vm4, %v550_v34  ;;  %v556_v55 = vpop.permute.xlu0 %555 }
  0xd3   : > { %878 = vrot.lane.b32.xlu1 %v2653_v25, %s2366_s28  ;;  %630 = vst.msk [vmem:[#allocation3 + $0xb0] sm:$0xff] %vm607_vm4, %v556_v55 }
  0xd4   : > { %884 = vrot.lane.b32.xlu0 %v2667_v28, %s2366_s28 }
  0xd5   : > { %v554_v5 = vpop.permute.xlu1 %553 }
  0xd6   : > { %629 = vst.msk [vmem:[#allocation3 + $0xa8] sm:$0xff] %vm607_vm4, %v554_v5  ;;  %v560_v18 = vpop.permute.xlu0 %559 }
  0xd7   : > { %882 = vrot.lane.b32.xlu1 %v2663_v27, %s2366_s28  ;;  %632 = vst.msk [vmem:[#allocation3 + $0xc0] sm:$0xff] %vm607_vm4, %v560_v18 }
  0xd8   : > { %888 = vrot.lane.b32.xlu0 %v2681_v32, %s2366_s28 }
  0xd9   : > { %v558_v56 = vpop.permute.xlu1 %557 }
  0xda   : > { %631 = vst.msk [vmem:[#allocation3 + $0xb8] sm:$0xff] %vm607_vm4, %v558_v56  ;;  %v564_v33 = vpop.permute.xlu0 %563  ;;  %v3208_v56 = vld [vmem:[#allocation2 + $0x180] sm:$0xff] }
  0xdb   : > { %886 = vrot.lane.b32.xlu1 %v2677_v31, %s2366_s28  ;;  %634 = vst.msk [vmem:[#allocation3 + $0xd0] sm:$0xff] %vm607_vm4, %v564_v33 }
  0xdc   : > { %892 = vrot.lane.b32.xlu0 %v2696_v38, %s2366_s28 }
  0xdd   : > { %v562_v54 = vpop.permute.xlu1 %561 }
  0xde   : > { %633 = vst.msk [vmem:[#allocation3 + $0xc8] sm:$0xff] %vm607_vm4, %v562_v54  ;;  %v568_v1 = vpop.permute.xlu0 %567 }
  0xdf   : > { %890 = vrot.lane.b32.xlu1 %v2692_v37, %s2366_s28  ;;  %636 = vst.msk [vmem:[#allocation3 + $0xe0] sm:$0xff] %vm607_vm4, %v568_v1 }
  0xe0   : > { %896 = vrot.lane.b32.xlu0 %v2708_v40, %s2366_s28 }
  0xe1   : > { %v566_v24 = vpop.permute.xlu1 %565 }
  0xe2   : > { %635 = vst.msk [vmem:[#allocation3 + $0xd8] sm:$0xff] %vm607_vm4, %v566_v24  ;;  %v572_v49 = vpop.permute.xlu0 %571  ;;  %v3222_v24 = vld [vmem:[#allocation2 + $0x188] sm:$0xff] }
  0xe3   : > { %894 = vrot.lane.b32.xlu1 %v2700_v39, %s2366_s28  ;;  %638 = vst.msk [vmem:[#allocation3 + $0xf0] sm:$0xff] %vm607_vm4, %v572_v49 }
  0xe4   : > { %900 = vrot.lane.b32.xlu0 %v2712_v42, %s2366_s28 }
  0xe5   : > { %v570_v47 = vpop.permute.xlu1 %569 }
  0xe6   : > { %637 = vst.msk [vmem:[#allocation3 + $0xe8] sm:$0xff] %vm607_vm4, %v570_v47  ;;  %v722_v34 = vpop.permute.xlu0 %721 }
  0xe7   : > { %898 = vrot.lane.b32.xlu1 %v2710_v41, %s2366_s28  ;;  %818 = vst.msk [vmem:[#allocation3] sm:$0xff] %vm817_vm5, %v722_v34 }
  0xe8   : > { %904 = vrot.lane.b32.xlu0 %v2728_v46, %s2366_s28 }
  0xe9   : > { %v574_v55 = vpop.permute.xlu1 %573 }
  0xea   : > { %639 = vst.msk [vmem:[#allocation3 + $0xf8] sm:$0xff] %vm607_vm4, %v574_v55  ;;  %v726_v5 = vpop.permute.xlu0 %725 }
  0xeb   : > { %902 = vrot.lane.b32.xlu1 %v2724_v45, %s2366_s28  ;;  %820 = vst.msk [vmem:[#allocation3 + $0x10] sm:$0xff] %vm817_vm5, %v726_v5 }
  0xec   : > { %908 = vrot.lane.b32.xlu0 %v2743_v52, %s2366_s28 }
  0xed   : > { %v724_v18 = vpop.permute.xlu1 %723 }
  0xee   : > { %819 = vst.msk [vmem:[#allocation3 + $0x8] sm:$0xff] %vm817_vm5, %v724_v18  ;;  %v730_v33 = vpop.permute.xlu0 %729  ;;  %v4018_v18 = vld [vmem:[#allocation10_spill] sm:$0xff] }
  0xef   : > { %906 = vrot.lane.b32.xlu1 %v2739_v51, %s2366_s28  ;;  %822 = vst.msk [vmem:[#allocation3 + $0x20] sm:$0xff] %vm817_vm5, %v730_v33  ;;  %v4019_v33 = vld [vmem:[#allocation12_spill] sm:$0xff] }
  0xf0   : > { %912 = vrot.lane.b32.xlu0 %v3208_v56, %s2366_s28 }
  0xf1   : > { %v728_v54 = vpop.permute.xlu1 %727 }
  0xf2   : > { %821 = vst.msk [vmem:[#allocation3 + $0x18] sm:$0xff] %vm817_vm5, %v728_v54  ;;  %v734_v1 = vpop.permute.xlu0 %733 }
  0xf3   : > { %910 = vrot.lane.b32.xlu1 %v2747_v53, %s2366_s28  ;;  %824 = vst.msk [vmem:[#allocation3 + $0x30] sm:$0xff] %vm817_vm5, %v734_v1  ;;  %v4020_v1 = vld [vmem:[#allocation13_spill] sm:$0xff] }
  0xf4   : > { %987 = vrot.lane.b32.xlu0 %v2601_v8, %s2367_s29 }
  0xf5   : > { %v732_v49 = vpop.permute.xlu1 %731 }
  0xf6   : > { %823 = vst.msk [vmem:[#allocation3 + $0x28] sm:$0xff] %vm817_vm5, %v732_v49  ;;  %v738_v47 = vpop.permute.xlu0 %737  ;;  %v4021_v49 = vld [vmem:[#allocation14_spill] sm:$0xff] }
  0xf7   : > { %914 = vrot.lane.b32.xlu1 %v3222_v24, %s2366_s28  ;;  %826 = vst.msk [vmem:[#allocation3 + $0x40] sm:$0xff] %vm817_vm5, %v738_v47 }
  0xf8   : > { %991 = vrot.lane.b32.xlu0 %v2618_v14, %s2367_s29 }
  0xf9   : > { %v736_v34 = vpop.permute.xlu1 %735 }
  0xfa   : > { %825 = vst.msk [vmem:[#allocation3 + $0x38] sm:$0xff] %vm817_vm5, %v736_v34  ;;  %v742_v55 = vpop.permute.xlu0 %741 }
  0xfb   : > { %989 = vrot.lane.b32.xlu1 %v2633_v17, %s2367_s29  ;;  %828 = vst.msk [vmem:[#allocation3 + $0x50] sm:$0xff] %vm817_vm5, %v742_v55  ;;  %v4022_v55 = vld [vmem:[#allocation15_spill] sm:$0xff] }
  0xfc   : > { %995 = vrot.lane.b32.xlu0 %v2645_v21, %s2367_s29 }
  0xfd   : > { %v740_v8 = vpop.permute.xlu1 %739 }
  0xfe   : > { %827 = vst.msk [vmem:[#allocation3 + $0x48] sm:$0xff] %vm817_vm5, %v740_v8  ;;  %v746_v5 = vpop.permute.xlu0 %745  ;;  %v4023_v8 = vld [vmem:[#allocation16_spill] sm:$0xff] }
  0xff   : > { %993 = vrot.lane.b32.xlu1 %v4018_v18, %s2367_s29  ;;  %830 = vst.msk [vmem:[#allocation3 + $0x60] sm:$0xff] %vm817_vm5, %v746_v5 }
 0x100   : > { %999 = vrot.lane.b32.xlu0 %v4019_v33, %s2367_s29 }
 0x101   : > { %v744_v54 = vpop.permute.xlu1 %743 }
 0x102   : > { %829 = vst.msk [vmem:[#allocation3 + $0x58] sm:$0xff] %vm817_vm5, %v744_v54  ;;  %v750_v17 = vpop.permute.xlu0 %749 }
 0x103   : > { %997 = vrot.lane.b32.xlu1 %v4020_v1, %s2367_s29  ;;  %832 = vst.msk [vmem:[#allocation3 + $0x70] sm:$0xff] %vm817_vm5, %v750_v17  ;;  %v4024_v17 = vld [vmem:[#allocation17_spill] sm:$0xff] }
 0x104   : > { %1003 = vrot.lane.b32.xlu0 %v4021_v49, %s2367_s29 }
 0x105   : > { %v748_v47 = vpop.permute.xlu1 %747 }
 0x106   : > { %831 = vst.msk [vmem:[#allocation3 + $0x68] sm:$0xff] %vm817_vm5, %v748_v47  ;;  %v754_v34 = vpop.permute.xlu0 %753  ;;  %v4025_v47 = vld [vmem:[#allocation25_spill] sm:$0xff] }
 0x107   : > { %1001 = vrot.lane.b32.xlu1 %v4022_v55, %s2367_s29  ;;  %834 = vst.msk [vmem:[#allocation3 + $0x80] sm:$0xff] %vm817_vm5, %v754_v34  ;;  %v4026_v34 = vld [vmem:[#allocation22_spill] sm:$0xff] }
 0x108   : > { %1007 = vrot.lane.b32.xlu0 %v4023_v8, %s2367_s29 }
 0x109   : > { %v752_v5 = vpop.permute.xlu1 %751 }
 0x10a   : > { %833 = vst.msk [vmem:[#allocation3 + $0x78] sm:$0xff] %vm817_vm5, %v752_v5  ;;  %v758_v54 = vpop.permute.xlu0 %757  ;;  %v4027_v5 = vld [vmem:[#allocation27_spill] sm:$0xff] }
 0x10b   : > { %1005 = vrot.lane.b32.xlu1 %v4024_v17, %s2367_s29  ;;  %836 = vst.msk [vmem:[#allocation3 + $0x90] sm:$0xff] %vm817_vm5, %v758_v54  ;;  %v4028_v54 = vld [vmem:[#allocation24_spill] sm:$0xff] }
 0x10c   : > { %1021 = vrot.lane.b32.xlu0 %v4025_v47, %s2367_s29 }
 0x10d   : > { %v756_v31 = vpop.permute.xlu1 %755 }
 0x10e   : > { %835 = vst.msk [vmem:[#allocation3 + $0x88] sm:$0xff] %vm817_vm5, %v756_v31  ;;  %v762_v28 = vpop.permute.xlu0 %761 }
 0x10f   : > { %1019 = vrot.lane.b32.xlu1 %v4026_v34, %s2367_s29  ;;  %838 = vst.msk [vmem:[#allocation3 + $0xa0] sm:$0xff] %vm817_vm5, %v762_v28 }
 0x110   : > { %1025 = vrot.lane.b32.xlu0 %v4027_v5, %s2367_s29 }
 0x111   : > { %v760_v27 = vpop.permute.xlu1 %759 }
 0x112   : > { %837 = vst.msk [vmem:[#allocation3 + $0x98] sm:$0xff] %vm817_vm5, %v760_v27  ;;  %v766_v26 = vpop.permute.xlu0 %765 }
 0x113   : > { %1023 = vrot.lane.b32.xlu1 %v4028_v54, %s2367_s29  ;;  %840 = vst.msk [vmem:[#allocation3 + $0xb0] sm:$0xff] %vm817_vm5, %v766_v26 }
 0x114   : > { %1123 = vrot.lane.b32.xlu0 %v2941_v30, %s2368_s30 }
 0x115   : > { %v764_v31 = vpop.permute.xlu1 %763 }
 0x116   : > { %839 = vst.msk [vmem:[#allocation3 + $0xa8] sm:$0xff] %vm817_vm5, %v764_v31  ;;  %v770_v28 = vpop.permute.xlu0 %769 }
 0x117   : > { %1121 = vrot.lane.b32.xlu1 %v2922_v10, %s2368_s30  ;;  %842 = vst.msk [vmem:[#allocation3 + $0xc0] sm:$0xff] %vm817_vm5, %v770_v28 }
 0x118   : > { %1155 = vrot.lane.b32.xlu0 %v3045_v50, %s2368_s30 }
 0x119   : > { %v768_v27 = vpop.permute.xlu1 %767 }
 0x11a   : > { %841 = vst.msk [vmem:[#allocation3 + $0xb8] sm:$0xff] %vm817_vm5, %v768_v27  ;;  %v774_v26 = vpop.permute.xlu0 %773 }
 0x11b   : > { %1153 = vrot.lane.b32.xlu1 %v3023_v22, %s2368_s30  ;;  %844 = vst.msk [vmem:[#allocation3 + $0xd0] sm:$0xff] %vm817_vm5, %v774_v26 }
 0x11c   : > { %1127 = vrot.lane.b32.xlu0 %v2954_v7, %s2368_s30 }
 0x11d   : > { %v772_v30 = vpop.permute.xlu1 %771 }
 0x11e   : > { %843 = vst.msk [vmem:[#allocation3 + $0xc8] sm:$0xff] %vm817_vm5, %v772_v30  ;;  %v778_v10 = vpop.permute.xlu0 %777 }
 0x11f   : > { %1125 = vrot.lane.b32.xlu1 %v2932_v6, %s2368_s30  ;;  %846 = vst.msk [vmem:[#allocation3 + $0xe0] sm:$0xff] %vm817_vm5, %v778_v10 }
 0x120   : > { %1159 = vrot.lane.b32.xlu0 %v3058_v63, %s2368_s30 }
 0x121   : > { %v776_v31 = vpop.permute.xlu1 %775 }
 0x122   : > { %845 = vst.msk [vmem:[#allocation3 + $0xd8] sm:$0xff] %vm817_vm5, %v776_v31  ;;  %v782_v28 = vpop.permute.xlu0 %781 }
 0x123   : > { %1157 = vrot.lane.b32.xlu1 %v3036_v48, %s2368_s30  ;;  %848 = vst.msk [vmem:[#allocation3 + $0xf0] sm:$0xff] %vm817_vm5, %v782_v28 }
 0x124   : > { %1254 = vrot.lane.b32.xlu0 %v2574_v62, %s2369_s3 }
 0x125   : > { %v780_v27 = vpop.permute.xlu1 %779 }
 0x126   : > { %847 = vst.msk [vmem:[#allocation3 + $0xe8] sm:$0xff] %vm817_vm5, %v780_v27  ;;  %v853_v26 = vpop.permute.xlu0 %852  ;;  %v2299_v27 = vld [vmem:[%s3901_s1 + $0x8] sm:$0xff]  }
 0x127   : > { %1252 = vrot.lane.b32.xlu1 %v2560_v57, %s2369_s3  ;;  %949 = vst.msk [vmem:[#allocation3] sm:$0xff] %vm948_vm6, %v853_v26 }
 0x128   : > { %1286 = vrot.lane.b32.xlu0 %v2692_v37, %s2369_s3 }
 0x129   : > { %v784_v30 = vpop.permute.xlu1 %783 }
 0x12a   : > { %849 = vst.msk [vmem:[#allocation3 + $0xf8] sm:$0xff] %vm817_vm5, %v784_v30  ;;  %v857_v10 = vpop.permute.xlu0 %856 }
 0x12b   : > { %1284 = vrot.lane.b32.xlu1 %v2681_v32, %s2369_s3  ;;  %951 = vst.msk [vmem:[#allocation3 + $0x10] sm:$0xff] %vm948_vm6, %v857_v10  ;;  %v2300_v10 = vld [vmem:[%s3901_s1] sm:$0xff]  }
 0x12c   : > { %1258 = vrot.lane.b32.xlu0 %v2590_v4, %s2369_s3 }
 0x12d   : > { %v855_v62 = vpop.permute.xlu1 %854 }
 0x12e   : > { %950 = vst.msk [vmem:[#allocation3 + $0x8] sm:$0xff] %vm948_vm6, %v855_v62  ;;  %v861_v57 = vpop.permute.xlu0 %860 }
 0x12f   : > { %1256 = vrot.lane.b32.xlu1 %v2588_v3, %s2369_s3  ;;  %953 = vst.msk [vmem:[#allocation3 + $0x20] sm:$0xff] %vm948_vm6, %v861_v57 }
 0x130   : > { %1290 = vrot.lane.b32.xlu0 %v2700_v39, %s2369_s3 }
 0x131   : > { %v859_v37 = vpop.permute.xlu1 %858 }
 0x132   : > { %952 = vst.msk [vmem:[#allocation3 + $0x18] sm:$0xff] %vm948_vm6, %v859_v37  ;;  %v865_v32 = vpop.permute.xlu0 %864 }
 0x133   : > { %1288 = vrot.lane.b32.xlu1 %v2696_v38, %s2369_s3  ;;  %955 = vst.msk [vmem:[#allocation3 + $0x30] sm:$0xff] %vm948_vm6, %v865_v32 }
 0x134   : > { %1389 = vrot.lane.b32.xlu0 %v4018_v18, %s2370_s4 }
 0x135   : > { %v863_v4 = vpop.permute.xlu1 %862 }
 0x136   : > { %954 = vst.msk [vmem:[#allocation3 + $0x28] sm:$0xff] %vm948_vm6, %v863_v4  ;;  %v869_v3 = vpop.permute.xlu0 %868 }
 0x137   : > { %1387 = vrot.lane.b32.xlu1 %v2618_v14, %s2370_s4  ;;  %957 = vst.msk [vmem:[#allocation3 + $0x40] sm:$0xff] %vm948_vm6, %v869_v3 }
 0x138   : > { %1421 = vrot.lane.b32.xlu0 %v4027_v5, %s2370_s4  ;;  %v2298_v5 = vld [vmem:[%s3901_s1 + $0x10] ss:$0 sps:$4 sm:$0x33]  }
 0x139   : > { %v867_v39 = vpop.permute.xlu1 %866  ;;  %2247 = vmatprep.subr.msk.bf16.mxu0 %vm1767_vm7, %v2298_v5  ;;  %v1769_v31 = vsel %vm1767_vm7, %v2298_v5, 0  ;;  %2248 = vmatprep.subr.msk.bf16.mxu1 %vm1767_vm7, %v2298_v5 }
 0x13a   : > { %956 = vst.msk [vmem:[#allocation3 + $0x38] sm:$0xff] %vm948_vm6, %v867_v39  ;;  %v873_v38 = vpop.permute.xlu0 %872  ;;  %2204 = vmatpush3.bf16.msra.mxu0 %v1769_v31  ;;  %2244 = vmatpush3.bf16.msra.mxu1 %v1769_v31  ;;  %v4031_v39 = vld [vmem:[#allocation28_spill] sm:$0xff]  ;;  %v4033_v31 = vld [vmem:[#allocation45_spill] sm:$0xff] }
 0x13b   : > { %1419 = vrot.lane.b32.xlu1 %v4028_v54, %s2370_s4  ;;  %959 = vst.msk [vmem:[#allocation3 + $0x50] sm:$0xff] %vm948_vm6, %v873_v38  ;;  %v4029_v54 = vld [vmem:[#allocation29_spill] sm:$0xff]  ;;  %2205 = vmatprep.subr.bf16.mxu0 %v2299_v27 }
 0x13c   : > { %1393 = vrot.lane.b32.xlu0 %v4020_v1, %s2370_s4  ;;  %2242 = vmatprep.subr.bf16.mxu1 %v2299_v27 }
 0x13d   : > { %v871_v18 = vpop.permute.xlu1 %870 }
 0x13e   : > { %958 = vst.msk [vmem:[#allocation3 + $0x48] sm:$0xff] %vm948_vm6, %v871_v18  ;;  %v877_v14 = vpop.permute.xlu0 %876  ;;  %2206 = vmatpush3.bf16.msra.mxu0 %v2299_v27  ;;  %2245 = vmatpush3.bf16.msra.mxu1 %v2299_v27 }
 0x13f   : > { %1391 = vrot.lane.b32.xlu1 %v2645_v21, %s2370_s4  ;;  %961 = vst.msk [vmem:[#allocation3 + $0x60] sm:$0xff] %vm948_vm6, %v877_v14  ;;  %v4030_v21 = vld [vmem:[#allocation26_spill] sm:$0xff]  ;;  %2207 = vmatprep.subr.bf16.mxu0 %v2300_v10 }
 0x140   : > { %1425 = vrot.lane.b32.xlu0 %v4029_v54, %s2370_s4  ;;  %2243 = vmatprep.subr.bf16.mxu1 %v2300_v10 }
 0x141   : > { %v875_v1 = vpop.permute.xlu1 %874 }
 0x142   : > { %960 = vst.msk [vmem:[#allocation3 + $0x58] sm:$0xff] %vm948_vm6, %v875_v1  ;;  %v881_v28 = vpop.permute.xlu0 %880  ;;  %2208 = vmatpush3.bf16.msra.mxu0 %v2300_v10  ;;  %2246 = vmatpush3.bf16.msra.mxu1 %v2300_v10  ;;  %v4035_v10 = vld [vmem:[#allocation30_spill] sm:$0xff] }
 0x143   : > { %1423 = vrot.lane.b32.xlu1 %v4030_v21, %s2370_s4  ;;  %963 = vst.msk [vmem:[#allocation3 + $0x70] sm:$0xff] %vm948_vm6, %v881_v28 }
 0x144   : > { %1523 = vrot.lane.b32.xlu0 %v2954_v7, %s2371_s14 }
 0x145   : > { %v879_v26 = vpop.permute.xlu1 %878 }
 0x146   : > { %962 = vst.msk [vmem:[#allocation3 + $0x68] sm:$0xff] %vm948_vm6, %v879_v26  ;;  %v885_v30 = vpop.permute.xlu0 %884 }
 0x147   : > { %1521 = vrot.lane.b32.xlu1 %v2932_v6, %s2371_s14  ;;  %965 = vst.msk [vmem:[#allocation3 + $0x80] sm:$0xff] %vm948_vm6, %v885_v30 }
 0x148   : > { %1555 = vrot.lane.b32.xlu0 %v3058_v63, %s2371_s14 }
 0x149   : > { %v883_v7 = vpop.permute.xlu1 %882 }
 0x14a   : > { %964 = vst.msk [vmem:[#allocation3 + $0x78] sm:$0xff] %vm948_vm6, %v883_v7  ;;  %v889_v62 = vpop.permute.xlu0 %888 }
 0x14b   : > { %1553 = vrot.lane.b32.xlu1 %v3036_v48, %s2371_s14  ;;  %967 = vst.msk [vmem:[#allocation3 + $0x90] sm:$0xff] %vm948_vm6, %v889_v62 }
 0x14c   : > { %1527 = vrot.lane.b32.xlu0 %v2967_v61, %s2371_s14 }
 0x14d   : > { %v887_v6 = vpop.permute.xlu1 %886 }
 0x14e   : > { %966 = vst.msk [vmem:[#allocation3 + $0x88] sm:$0xff] %vm948_vm6, %v887_v6  ;;  %v893_v63 = vpop.permute.xlu0 %892 }
 0x14f   : > { %1525 = vrot.lane.b32.xlu1 %v2945_v0, %s2371_s14  ;;  %969 = vst.msk [vmem:[#allocation3 + $0xa0] sm:$0xff] %vm948_vm6, %v893_v63 }
 0x150   : > { %1559 = vrot.lane.b32.xlu0 %v3071_v36, %s2371_s14 }
 0x151   : > { %v891_v57 = vpop.permute.xlu1 %890 }
 0x152   : > { %968 = vst.msk [vmem:[#allocation3 + $0x98] sm:$0xff] %vm948_vm6, %v891_v57  ;;  %v897_v48 = vpop.permute.xlu0 %896  ;;  %v4037_v57 = vld [vmem:[#allocation37_spill] sm:$0xff] }
 0x153   : > { %1557 = vrot.lane.b32.xlu1 %v3049_v9, %s2371_s14  ;;  %971 = vst.msk [vmem:[#allocation3 + $0xb0] sm:$0xff] %vm948_vm6, %v897_v48 }
 0x154   : > { %1029 = vrot.lane.b32.xlu0 %v4029_v54, %s2367_s29  ;;  %v4032_v54 = vld [vmem:[#allocation36_spill] sm:$0xff] }
 0x155   : > { %v895_v37 = vpop.permute.xlu1 %894 }
 0x156   : > { %970 = vst.msk [vmem:[#allocation3 + $0xa8] sm:$0xff] %vm948_vm6, %v895_v37  ;;  %v901_v32 = vpop.permute.xlu0 %900 }
 0x157   : > { %1027 = vrot.lane.b32.xlu1 %v4030_v21, %s2367_s29  ;;  %973 = vst.msk [vmem:[#allocation3 + $0xc0] sm:$0xff] %vm948_vm6, %v901_v32 }
 0x158   : > { %1033 = vrot.lane.b32.xlu0 %v2878_v23, %s2367_s29 }
 0x159   : > { %v899_v4 = vpop.permute.xlu1 %898 }
 0x15a   : > { %972 = vst.msk [vmem:[#allocation3 + $0xb8] sm:$0xff] %vm948_vm6, %v899_v4  ;;  %v905_v3 = vpop.permute.xlu0 %904  ;;  %v4038_v4 = vld [vmem:[#allocation31_spill] sm:$0xff] }
 0x15b   : > { %1031 = vrot.lane.b32.xlu1 %v4031_v39, %s2367_s29  ;;  %975 = vst.msk [vmem:[#allocation3 + $0xd0] sm:$0xff] %vm948_vm6, %v905_v3 }
 0x15c   : > { %1131 = vrot.lane.b32.xlu0 %v2967_v61, %s2368_s30 }
 0x15d   : > { %v903_v38 = vpop.permute.xlu1 %902 }
 0x15e   : > { %974 = vst.msk [vmem:[#allocation3 + $0xc8] sm:$0xff] %vm948_vm6, %v903_v38  ;;  %v909_v18 = vpop.permute.xlu0 %908  ;;  %v4039_v38 = vld [vmem:[#allocation19_spill] sm:$0xff] }
 0x15f   : > { %1129 = vrot.lane.b32.xlu1 %v2945_v0, %s2368_s30  ;;  %977 = vst.msk [vmem:[#allocation3 + $0xe0] sm:$0xff] %vm948_vm6, %v909_v18 }
 0x160   : > { %1163 = vrot.lane.b32.xlu0 %v3071_v36, %s2368_s30 }
 0x161   : > { %v907_v14 = vpop.permute.xlu1 %906 }
 0x162   : > { %976 = vst.msk [vmem:[#allocation3 + $0xd8] sm:$0xff] %vm948_vm6, %v907_v14  ;;  %v913_v5 = vpop.permute.xlu0 %912 }
 0x163   : > { %1161 = vrot.lane.b32.xlu1 %v3049_v9, %s2368_s30  ;;  %979 = vst.msk [vmem:[#allocation3 + $0xf0] sm:$0xff] %vm948_vm6, %v913_v5  ;;  %v4040_v5 = vld [vmem:[#allocation34_spill] sm:$0xff] }
 0x164   : > { %1135 = vrot.lane.b32.xlu0 %v2980_v60, %s2368_s30 }
 0x165   : > { %v911_v61 = vpop.permute.xlu1 %910 }
 0x166   : > { %978 = vst.msk [vmem:[#allocation3 + $0xe8] sm:$0xff] %vm948_vm6, %v911_v61  ;;  %v988_v0 = vpop.permute.xlu0 %987 }
 0x167   : > { %1133 = vrot.lane.b32.xlu1 %v4032_v54, %s2368_s30  ;;  %1084 = vst.msk [vmem:[#allocation3] sm:$0xff] %vm1083_vm8, %v988_v0 }
 0x168   : > { %1167 = vrot.lane.b32.xlu0 %v3085_v35, %s2368_s30 }
 0x169   : > { %v915_v36 = vpop.permute.xlu1 %914 }
 0x16a   : > { %980 = vst.msk [vmem:[#allocation3 + $0xf8] sm:$0xff] %vm948_vm6, %v915_v36  ;;  %v992_v9 = vpop.permute.xlu0 %991 }
 0x16b   : > { %1165 = vrot.lane.b32.xlu1 %v4033_v31, %s2368_s30  ;;  %1086 = vst.msk [vmem:[#allocation3 + $0x10] sm:$0xff] %vm1083_vm8, %v992_v9 }
 0x16c   : > { %1262 = vrot.lane.b32.xlu0 %v2611_v12, %s2369_s3 }
 0x16d   : > { %v990_v1 = vpop.permute.xlu1 %989 }
 0x16e   : > { %1085 = vst.msk [vmem:[#allocation3 + $0x8] sm:$0xff] %vm1083_vm8, %v990_v1  ;;  %v996_v28 = vpop.permute.xlu0 %995  ;;  %v4042_v1 = vld [vmem:[#allocation41_spill] sm:$0xff] }
 0x16f   : > { %1260 = vrot.lane.b32.xlu1 %v2609_v11, %s2369_s3  ;;  %1088 = vst.msk [vmem:[#allocation3 + $0x20] sm:$0xff] %vm1083_vm8, %v996_v28 }
 0x170   : > { %1294 = vrot.lane.b32.xlu0 %v2710_v41, %s2369_s3 }
 0x171   : > { %v994_v27 = vpop.permute.xlu1 %993 }
 0x172   : > { %1087 = vst.msk [vmem:[#allocation3 + $0x18] sm:$0xff] %vm1083_vm8, %v994_v27  ;;  %v1000_v21 = vpop.permute.xlu0 %999 }
 0x173   : > { %1292 = vrot.lane.b32.xlu1 %v2708_v40, %s2369_s3  ;;  %1090 = vst.msk [vmem:[#allocation3 + $0x30] sm:$0xff] %vm1083_vm8, %v1000_v21 }
 0x174   : > { %1266 = vrot.lane.b32.xlu0 %v2624_v15, %s2369_s3 }
 0x175   : > { %v998_v12 = vpop.permute.xlu1 %997 }
 0x176   : > { %1089 = vst.msk [vmem:[#allocation3 + $0x28] sm:$0xff] %vm1083_vm8, %v998_v12  ;;  %v1004_v11 = vpop.permute.xlu0 %1003 }
 0x177   : > { %1264 = vrot.lane.b32.xlu1 %v2613_v13, %s2369_s3  ;;  %1092 = vst.msk [vmem:[#allocation3 + $0x40] sm:$0xff] %vm1083_vm8, %v1004_v11 }
 0x178   : > { %1298 = vrot.lane.b32.xlu0 %v2724_v45, %s2369_s3 }
 0x179   : > { %v1002_v41 = vpop.permute.xlu1 %1001 }
 0x17a   : > { %1091 = vst.msk [vmem:[#allocation3 + $0x38] sm:$0xff] %vm1083_vm8, %v1002_v41  ;;  %v1008_v40 = vpop.permute.xlu0 %1007 }
 0x17b   : > { %1296 = vrot.lane.b32.xlu1 %v2712_v42, %s2369_s3  ;;  %1094 = vst.msk [vmem:[#allocation3 + $0x50] sm:$0xff] %vm1083_vm8, %v1008_v40 }
 0x17c   : > { %1397 = vrot.lane.b32.xlu0 %v4022_v55, %s2370_s4 }
 0x17d   : > { %v1006_v15 = vpop.permute.xlu1 %1005 }
 0x17e   : > { %1093 = vst.msk [vmem:[#allocation3 + $0x48] sm:$0xff] %vm1083_vm8, %v1006_v15  ;;  %v1022_v13 = vpop.permute.xlu0 %1021 }
 0x17f   : > { %1395 = vrot.lane.b32.xlu1 %v4019_v33, %s2370_s4  ;;  %1101 = vst.msk [vmem:[#allocation3 + $0x88] sm:$0xff] %vm1083_vm8, %v1022_v13 }
 0x180   : > { %1429 = vrot.lane.b32.xlu0 %v2878_v23, %s2370_s4  ;;  %v4034_v23 = vld [vmem:[#allocation32_spill] sm:$0xff] }
 0x181   : > { %v1020_v45 = vpop.permute.xlu1 %1019 }
 0x182   : > { %1100 = vst.msk [vmem:[#allocation3 + $0x80] sm:$0xff] %vm1083_vm8, %v1020_v45  ;;  %v1026_v42 = vpop.permute.xlu0 %1025 }
 0x183   : > { %1427 = vrot.lane.b32.xlu1 %v4031_v39, %s2370_s4  ;;  %1103 = vst.msk [vmem:[#allocation3 + $0x98] sm:$0xff] %vm1083_vm8, %v1026_v42 }
 0x184   : > { %1401 = vrot.lane.b32.xlu0 %v4024_v17, %s2370_s4 }
 0x185   : > { %v1024_v55 = vpop.permute.xlu1 %1023 }
 0x186   : > { %1102 = vst.msk [vmem:[#allocation3 + $0x90] sm:$0xff] %vm1083_vm8, %v1024_v55  ;;  %v1124_v33 = vpop.permute.xlu0 %1123 }
 0x187   : > { %1399 = vrot.lane.b32.xlu1 %v4021_v49, %s2370_s4  ;;  %1219 = vst.msk [vmem:[#allocation3 + $0x8] sm:$0xff] %vm1217_vm9, %v1124_v33  ;;  %v4043_v33 = vld [vmem:[#allocation18_spill] sm:$0xff] }
 0x188   : > { %1433 = vrot.lane.b32.xlu0 %v4034_v23, %s2370_s4 }
 0x189   : > { %v1122_v26 = vpop.permute.xlu1 %1121 }
 0x18a   : > { %1218 = vst.msk [vmem:[#allocation3] sm:$0xff] %vm1217_vm9, %v1122_v26  ;;  %v1156_v30 = vpop.permute.xlu0 %1155 }
 0x18b   : > { %1431 = vrot.lane.b32.xlu1 %v4035_v10, %s2370_s4  ;;  %1235 = vst.msk [vmem:[#allocation3 + $0x88] sm:$0xff] %vm1217_vm9, %v1156_v30 }
 0x18c   : > { %1531 = vrot.lane.b32.xlu0 %v2980_v60, %s2371_s14  ;;  %v4036_v60 = vld [vmem:[#allocation39_spill] sm:$0xff] }
 0x18d   : > { %v1154_v17 = vpop.permute.xlu1 %1153 }
 0x18e   : > { %1234 = vst.msk [vmem:[#allocation3 + $0x80] sm:$0xff] %vm1217_vm9, %v1154_v17  ;;  %v1128_v49 = vpop.permute.xlu0 %1127  ;;  %v4044_v17 = vld [vmem:[#allocation33_spill] sm:$0xff] }
 0x18f   : > { %1529 = vrot.lane.b32.xlu1 %v4032_v54, %s2371_s14  ;;  %1221 = vst.msk [vmem:[#allocation3 + $0x18] sm:$0xff] %vm1217_vm9, %v1128_v49  ;;  %v4041_v54 = vld [vmem:[#allocation38_spill] sm:$0xff] }
 0x190   : > { %1563 = vrot.lane.b32.xlu0 %v3085_v35, %s2371_s14 }
 0x191   : > { %v1126_v7 = vpop.permute.xlu1 %1125 }
 0x192   : > { %1220 = vst.msk [vmem:[#allocation3 + $0x10] sm:$0xff] %vm1217_vm9, %v1126_v7  ;;  %v1160_v62 = vpop.permute.xlu0 %1159 }
 0x193   : > { %1561 = vrot.lane.b32.xlu1 %v4033_v31, %s2371_s14  ;;  %1237 = vst.msk [vmem:[#allocation3 + $0x98] sm:$0xff] %vm1217_vm9, %v1160_v62  ;;  %v4045_v62 = vld [vmem:[#allocation21_spill] sm:$0xff] }
 0x194   : > { %1535 = vrot.lane.b32.xlu0 %v4036_v60, %s2371_s14 }
 0x195   : > { %v1158_v6 = vpop.permute.xlu1 %1157 }
 0x196   : > { %1236 = vst.msk [vmem:[#allocation3 + $0x90] sm:$0xff] %vm1217_vm9, %v1158_v6  ;;  %v1255_v63 = vpop.permute.xlu0 %1254 }
 0x197   : > { %1533 = vrot.lane.b32.xlu1 %v4037_v57, %s2371_s14  ;;  %1350 = vst.msk [vmem:[#allocation3 + $0x8] sm:$0xff] %vm1348_vm10, %v1255_v63  ;;  %v4046_v63 = vld [vmem:[#allocation35_spill] sm:$0xff] }
 0x198   : > { %1567 = vrot.lane.b32.xlu0 %v3099_v29, %s2371_s14 }
 0x199   : > { %v1253_v35 = vpop.permute.xlu1 %1252 }
 0x19a   : > { %1349 = vst.msk [vmem:[#allocation3] sm:$0xff] %vm1348_vm10, %v1253_v35  ;;  %v1287_v48 = vpop.permute.xlu0 %1286 }
 0x19b   : > { %1565 = vrot.lane.b32.xlu1 %v3075_v2, %s2371_s14  ;;  %1366 = vst.msk [vmem:[#allocation3 + $0x88] sm:$0xff] %vm1348_vm10, %v1287_v48  ;;  %v4047_v48 = vld [vmem:[#allocation40_spill] sm:$0xff] }
 0x19c   : > { %1037 = vrot.lane.b32.xlu0 %v4034_v23, %s2367_s29 }
 0x19d   : > { %v1285_v37 = vpop.permute.xlu1 %1284 }
 0x19e   : > { %1365 = vst.msk [vmem:[#allocation3 + $0x80] sm:$0xff] %vm1348_vm10, %v1285_v37  ;;  %v1259_v32 = vpop.permute.xlu0 %1258 }
 0x19f   : > { %1035 = vrot.lane.b32.xlu1 %v4035_v10, %s2367_s29  ;;  %1352 = vst.msk [vmem:[#allocation3 + $0x18] sm:$0xff] %vm1348_vm10, %v1259_v32 }
 0x1a0   : > { %1039 = vrot.lane.b32.xlu0 %v4038_v4, %s2367_s29 }
 0x1a1   : > { %v1257_v3 = vpop.permute.xlu1 %1256 }
 0x1a2   : > { %1351 = vst.msk [vmem:[#allocation3 + $0x10] sm:$0xff] %vm1348_vm10, %v1257_v3  ;;  %v1291_v39 = vpop.permute.xlu0 %1290  ;;  %v4048_v3 = vld [vmem:[#allocation43_spill] sm:$0xff] }
 0x1a3   : > { %1009 = vrot.lane.b32.xlu1 %v4039_v38, %s2367_s29  ;;  %1368 = vst.msk [vmem:[#allocation3 + $0x98] sm:$0xff] %vm1348_vm10, %v1291_v39 }
 0x1a4   : > { %1137 = vrot.lane.b32.xlu0 %v4037_v57, %s2368_s30 }
 0x1a5   : > { %v1289_v18 = vpop.permute.xlu1 %1288 }
 0x1a6   : > { %1367 = vst.msk [vmem:[#allocation3 + $0x90] sm:$0xff] %vm1348_vm10, %v1289_v18  ;;  %v1390_v14 = vpop.permute.xlu0 %1389  ;;  %v983_v18 = vrot.slane %v3222_v24, 1 }
 0x1a7   : > { %1041 = vrot.lane.b32.xlu1 %v4040_v5, %s2367_s29  ;;  %1485 = vst.msk [vmem:[#allocation3 + $0x8] sm:$0xff] %vm1483_vm11, %v1390_v14 }
 0x1a8   : > { %1169 = vrot.lane.b32.xlu0 %v3075_v2, %s2368_s30 }
 0x1a9   : > { %v1388_v61 = vpop.permute.xlu1 %1387 }
 0x1aa   : > { %1484 = vst.msk [vmem:[#allocation3] sm:$0xff] %vm1483_vm11, %v1388_v61  ;;  %v1422_v0 = vpop.permute.xlu0 %1421  ;;  %v4049_v61 = vld [vmem:[#allocation20_spill] sm:$0xff] }
 0x1ab   : > { %1139 = vrot.lane.b32.xlu1 %v4036_v60, %s2368_s30  ;;  %1501 = vst.msk [vmem:[#allocation3 + $0x88] sm:$0xff] %vm1483_vm11, %v1422_v0 }
 0x1ac   : > { %1141 = vrot.lane.b32.xlu0 %v4041_v54, %s2368_s30 }
 0x1ad   : > { %v1420_v36 = vpop.permute.xlu1 %1419 }
 0x1ae   : > { %1500 = vst.msk [vmem:[#allocation3 + $0x80] sm:$0xff] %vm1483_vm11, %v1420_v36  ;;  %v1394_v9 = vpop.permute.xlu0 %1393  ;;  %v346_v36 = vld [vmem:[#allocation2 + $0x190] sm:$0x3] }
 0x1af   : > { %1171 = vrot.lane.b32.xlu1 %v3099_v29, %s2368_s30  ;;  %1487 = vst.msk [vmem:[#allocation3 + $0x18] sm:$0xff] %vm1483_vm11, %v1394_v9 }
 0x1b0   : > { %1173 = vrot.lane.b32.xlu0 %v3089_v44, %s2368_s30 }
 0x1b1   : > { %v1392_v2 = vpop.permute.xlu1 %1391 }
 0x1b2   : > { %1486 = vst.msk [vmem:[#allocation3 + $0x10] sm:$0xff] %vm1483_vm11, %v1392_v2  ;;  %v1426_v31 = vpop.permute.xlu0 %1425  ;;  %v985_v2 = vrot.slane %v346_v36, 1 }
 0x1b3   : > { %1143 = vrot.lane.b32.xlu1 %v4042_v1, %s2368_s30  ;;  %1503 = vst.msk [vmem:[#allocation3 + $0x98] sm:$0xff] %vm1483_vm11, %v1426_v31 }
 0x1b4   : > { %1268 = vrot.lane.b32.xlu0 %v2628_v16, %s2369_s3 }
 0x1b5   : > { %v1424_v28 = vpop.permute.xlu1 %1423 }
 0x1b6   : > { %1502 = vst.msk [vmem:[#allocation3 + $0x90] sm:$0xff] %vm1483_vm11, %v1424_v28  ;;  %v1524_v29 = vpop.permute.xlu0 %1523  ;;  %v4050_v28 = vld [vmem:[#allocation23_spill] sm:$0xff] }
 0x1b7   : > { %1175 = vrot.lane.b32.xlu1 %v3112_v43, %s2368_s30  ;;  %1619 = vst.msk [vmem:[#allocation3 + $0x8] sm:$0xff] %vm1617_vm12, %v1524_v29  ;;  %v3625_v29 = vsel %vm430_vm2, %v983_v18, %v985_v2 }
 0x1b8   : > { %1300 = vrot.lane.b32.xlu0 %v2728_v46, %s2369_s3 }
 0x1b9   : > { %v1522_v27 = vpop.permute.xlu1 %1521 }
 0x1ba   : > { %1618 = vst.msk [vmem:[#allocation3] sm:$0xff] %vm1617_vm12, %v1522_v27  ;;  %v1556_v21 = vpop.permute.xlu0 %1555 }
 0x1bb   : > { %1270 = vrot.lane.b32.xlu1 %v2638_v19, %s2369_s3  ;;  %1635 = vst.msk [vmem:[#allocation3 + $0x88] sm:$0xff] %vm1617_vm12, %v1556_v21 }
 0x1bc   : > { %1272 = vrot.lane.b32.xlu0 %v2642_v20, %s2369_s3 }
 0x1bd   : > { %v1554_v16 = vpop.permute.xlu1 %1553 }
 0x1be   : > { %1634 = vst.msk [vmem:[#allocation3 + $0x80] sm:$0xff] %vm1617_vm12, %v1554_v16  ;;  %v1528_v12 = vpop.permute.xlu0 %1527  ;;  %v1651_v46 = vld [vmem:[#allocation3 + $0x8] sm:$0xff]  ;;  %v1116_v16 = vrot.slane %v3208_v56, 2 }
 0x1bf   : > { %1302 = vrot.lane.b32.xlu1 %v2739_v51, %s2369_s3  ;;  %1621 = vst.msk [vmem:[#allocation3 + $0x18] sm:$0xff] %vm1617_vm12, %v1528_v12  ;;  %v1117_v12 = vrot.slane %v3222_v24, 2 }
 0x1c0   : > { %1304 = vrot.lane.b32.xlu0 %v2743_v52, %s2369_s3 }
 0x1c1   : > { %v1526_v11 = vpop.permute.xlu1 %1525  ;;  %v1650_v19 = vld [vmem:[#allocation3] sm:$0xff] }
 0x1c2   : > { %1620 = vst.msk [vmem:[#allocation3 + $0x10] sm:$0xff] %vm1617_vm12, %v1526_v11  ;;  %v1682_v41 = vpack.c.bf16 %v1651_v46, %v1650_v19  ;;  %v1560_v20 = vpop.permute.xlu0 %1559  ;;  %v1667_v40 = vld [vmem:[#allocation3 + $0x88] sm:$0xff]  ;;  %v4051_v19 = vld [vmem:[#allocation42_spill] sm:$0xff] }
 0x1c3   : > { %1274 = vrot.lane.b32.xlu1 %v2653_v25, %s2369_s3  ;;  %1637 = vst.msk [vmem:[#allocation3 + $0x98] sm:$0xff] %vm1617_vm12, %v1560_v20  ;;  %v3644_v20 = vsel %vm640_vm3, %v1116_v16, %v1117_v12 }
 0x1c4   : > { %2209 = vmatprep.mubr.msk.bf16.mxu0 %vm1718_vm13, %v1682_v41  ;;  %1403 = vrot.lane.b32.xlu0 %v4023_v8, %s2370_s4 }
 0x1c5   : > { %v1558_v51 = vpop.permute.xlu1 %1557  ;;  %v1666_v52 = vld [vmem:[#allocation3 + $0x80] sm:$0xff] }
 0x1c6   : > { %1636 = vst.msk [vmem:[#allocation3 + $0x90] sm:$0xff] %vm1617_vm12, %v1558_v51  ;;  %v1690_v15 = vpack.c.bf16 %v1667_v40, %v1666_v52  ;;  %v1030_v13 = vpop.permute.xlu0 %1029  ;;  %v1653_v25 = vld [vmem:[#allocation3 + $0x18] sm:$0xff]  ;;  %v1119_v40 = vrot.slane %v346_v36, 2 }
 0x1c7   : > { %1306 = vrot.lane.b32.xlu1 %v2747_v53, %s2369_s3  ;;  %1105 = vst.msk [vmem:[#allocation3 + $0xa8] sm:$0xff] %vm1083_vm8, %v1030_v13 }
 0x1c8   : > { %2225 = vmatprep.mubr.msk.bf16.mxu1 %vm1718_vm13, %v1690_v15  ;;  %1435 = vrot.lane.b32.xlu0 %v4038_v4, %s2370_s4  ;;  %v4052_v15 = vld [vmem:[#allocation44_spill] sm:$0xff]  ;;  %v3657_v13 = vsel %vm640_vm3, %v1117_v12, %v1119_v40 }
 0x1c9   : > { %v1028_v45 = vpop.permute.xlu1 %1027  ;;  %v1652_v42 = vld [vmem:[#allocation3 + $0x10] sm:$0xff] }
 0x1ca   : > { %1104 = vst.msk [vmem:[#allocation3 + $0xa0] sm:$0xff] %vm1083_vm8, %v1028_v45  ;;  %v1683_v8 = vpack.c.bf16 %v1653_v25, %v1652_v42  ;;  %v1034_v55 = vpop.permute.xlu0 %1033  ;;  %v1669_v53 = vld [vmem:[#allocation3 + $0x98] sm:$0xff] }
 0x1cb   : > { %1405 = vrot.lane.b32.xlu1 %v4039_v38, %s2370_s4  ;;  %1107 = vst.msk [vmem:[#allocation3 + $0xb8] sm:$0xff] %vm1083_vm8, %v1034_v55  ;;  %v982_v38 = vrot.slane %v3208_v56, 1 }
 0x1cc   : > { %2210 = vmatmul.mubr.msk.bf16.vlgmr.msra.gmra.mxu0 %vm1718_vm13, %v1683_v8  ;;  %1407 = vrot.lane.b32.xlu0 %v4043_v33, %s2370_s4 }
 0x1cd   : > { %v1032_v23 = vpop.permute.xlu1 %1031  ;;  %v1668_v26 = vld [vmem:[#allocation3 + $0x90] sm:$0xff] }
 0x1ce   : > { %1106 = vst.msk [vmem:[#allocation3 + $0xb0] sm:$0xff] %vm1083_vm8, %v1032_v23  ;;  %v1691_v30 = vpack.c.bf16 %v1669_v53, %v1668_v26  ;;  %v1132_v10 = vpop.permute.xlu0 %1131  ;;  %v4054_v23 = vld [vmem:[#allocation8_spill] sm:$0xff] }
 0x1cf   : > { %1437 = vrot.lane.b32.xlu1 %v4040_v5, %s2370_s4  ;;  %1223 = vst.msk [vmem:[#allocation3 + $0x28] sm:$0xff] %vm1217_vm9, %v1132_v10 }
 0x1d0   : > { %2226 = vmatmul.mubr.msk.bf16.vlgmr.msra.gmra.mxu1 %vm1718_vm13, %v1691_v30  ;;  %1439 = vrot.lane.b32.xlu0 %v4044_v17, %s2370_s4  ;;  %v4055_v30 = vld [vmem:[#allocation9_spill] sm:$0xff] }
 0x1d1   : > { %v1130_v49 = vpop.permute.xlu1 %1129 }
 0x1d2   : > { %1222 = vst.msk [vmem:[#allocation3 + $0x20] sm:$0xff] %vm1217_vm9, %v1130_v49  ;;  %v1164_v7 = vpop.permute.xlu0 %1163 }
 0x1d3   : > { %1409 = vrot.lane.b32.xlu1 %v4045_v62, %s2370_s4  ;;  %1239 = vst.msk [vmem:[#allocation3 + $0xa8] sm:$0xff] %vm1217_vm9, %v1164_v7 }
 0x1d4   : > { %1537 = vrot.lane.b32.xlu0 %v4041_v54, %s2371_s14  ;;  %v3612_v54 = vsel %vm430_vm2, %v982_v38, %v983_v18 }
 0x1d5   : > { %v1162_v60 = vpop.permute.xlu1 %1161 }
 0x1d6   : > { %1238 = vst.msk [vmem:[#allocation3 + $0xa0] sm:$0xff] %vm1217_vm9, %v1162_v60  ;;  %v1136_v6 = vpop.permute.xlu0 %1135 }
 0x1d7   : > { %1441 = vrot.lane.b32.xlu1 %v4046_v63, %s2370_s4  ;;  %1225 = vst.msk [vmem:[#allocation3 + $0x38] sm:$0xff] %vm1217_vm9, %v1136_v6 }
 0x1d8   : > { %1569 = vrot.lane.b32.xlu0 %v3089_v44, %s2371_s14 }
 0x1d9   : > { %v1134_v57 = vpop.permute.xlu1 %1133 }
 0x1da   : > { %1224 = vst.msk [vmem:[#allocation3 + $0x30] sm:$0xff] %vm1217_vm9, %v1134_v57  ;;  %v1168_v35 = vpop.permute.xlu0 %1167 }
 0x1db   : > { %1539 = vrot.lane.b32.xlu1 %v4042_v1, %s2371_s14  ;;  %1241 = vst.msk [vmem:[#allocation3 + $0xb8] sm:$0xff] %vm1217_vm9, %v1168_v35  ;;  %v4056_v35 = vld [vmem:[#allocation11_spill] sm:$0xff] }
 0x1dc   : > { %1541 = vrot.lane.b32.xlu0 %v4047_v48, %s2371_s14 }
 0x1dd   : > { %v1166_v37 = vpop.permute.xlu1 %1165 }
 0x1de   : > { %1240 = vst.msk [vmem:[#allocation3 + $0xb0] sm:$0xff] %vm1217_vm9, %v1166_v37  ;;  %v1263_v32 = vpop.permute.xlu0 %1262 }
 0x1df   : > { %1571 = vrot.lane.b32.xlu1 %v3112_v43, %s2371_s14  ;;  %1354 = vst.msk [vmem:[#allocation3 + $0x28] sm:$0xff] %vm1348_vm10, %v1263_v32 }
 0x1e0   : > { %1573 = vrot.lane.b32.xlu0 %v3103_v59, %s2371_s14 }
 0x1e1   : > { %v1261_v44 = vpop.permute.xlu1 %1260 }
 0x1e2   : > { %1353 = vst.msk [vmem:[#allocation3 + $0x20] sm:$0xff] %vm1348_vm10, %v1261_v44  ;;  %v1295_v4 = vpop.permute.xlu0 %1294 }
 0x1e3   : > { %1543 = vrot.lane.b32.xlu1 %v4048_v3, %s2371_s14  ;;  %1370 = vst.msk [vmem:[#allocation3 + $0xa8] sm:$0xff] %vm1348_vm10, %v1295_v4 }
 0x1e4   : > { %1011 = vrot.lane.b32.xlu0 %v4043_v33, %s2367_s29 }
 0x1e5   : > { %v1293_v39 = vpop.permute.xlu1 %1292 }
 0x1e6   : > { %1369 = vst.msk [vmem:[#allocation3 + $0xa0] sm:$0xff] %vm1348_vm10, %v1293_v39  ;;  %v1267_v43 = vpop.permute.xlu0 %1266 }
 0x1e7   : > { %1575 = vrot.lane.b32.xlu1 %v3122_v58, %s2371_s14  ;;  %1356 = vst.msk [vmem:[#allocation3 + $0x38] sm:$0xff] %vm1348_vm10, %v1267_v43 }
 0x1e8   : > { %1043 = vrot.lane.b32.xlu0 %v4044_v17, %s2367_s29 }
 0x1e9   : > { %v1265_v14 = vpop.permute.xlu1 %1264 }
 0x1ea   : > { %1355 = vst.msk [vmem:[#allocation3 + $0x30] sm:$0xff] %vm1348_vm10, %v1265_v14  ;;  %v1299_v5 = vpop.permute.xlu0 %1298 }
 0x1eb   : > { %1013 = vrot.lane.b32.xlu1 %v4045_v62, %s2367_s29  ;;  %1372 = vst.msk [vmem:[#allocation3 + $0xb8] sm:$0xff] %vm1348_vm10, %v1299_v5  ;;  %v349_v5 = vld [vmem:[#allocation2 + $0x1a8] sm:$0x3] }
 0x1ec   : > { %1015 = vrot.lane.b32.xlu0 %v4049_v61, %s2367_s29  ;;  %v1519_v16 = vrot.slane %v349_v5, 2 }
 0x1ed   : > { %v1297_v0 = vpop.permute.xlu1 %1296 }
 0x1ee   : > { %1371 = vst.msk [vmem:[#allocation3 + $0xb0] sm:$0xff] %vm1348_vm10, %v1297_v0  ;;  %v1398_v9 = vpop.permute.xlu0 %1397  ;;  %v1385_v0 = vrot.slane %v349_v5, 1 }
 0x1ef   : > { %1045 = vrot.lane.b32.xlu1 %v4046_v63, %s2367_s29  ;;  %1489 = vst.msk [vmem:[#allocation3 + $0x28] sm:$0xff] %vm1483_vm11, %v1398_v9 }
 0x1f0   : > { %1047 = vrot.lane.b32.xlu0 %v3612_v54, %s2367_s29 }
 0x1f1   : > { %v1396_v31 = vpop.permute.xlu1 %1395 }
 0x1f2   : > { %1488 = vst.msk [vmem:[#allocation3 + $0x20] sm:$0xff] %vm1483_vm11, %v1396_v31  ;;  %v1430_v1 = vpop.permute.xlu0 %1429 }
 0x1f3   : > { %1017 = vrot.lane.b32.xlu1 %v4050_v28, %s2367_s29  ;;  %1505 = vst.msk [vmem:[#allocation3 + $0xa8] sm:$0xff] %vm1483_vm11, %v1430_v1 }
 0x1f4   : > { %1145 = vrot.lane.b32.xlu0 %v4047_v48, %s2368_s30 }
 0x1f5   : > { %v1428_v27 = vpop.permute.xlu1 %1427 }
 0x1f6   : > { %1504 = vst.msk [vmem:[#allocation3 + $0xa0] sm:$0xff] %vm1483_vm11, %v1428_v27  ;;  %v1402_v21 = vpop.permute.xlu0 %1401 }
 0x1f7   : > { %1049 = vrot.lane.b32.xlu1 %v3625_v29, %s2367_s29  ;;  %1491 = vst.msk [vmem:[#allocation3 + $0x38] sm:$0xff] %vm1483_vm11, %v1402_v21  ;;  %s3851_s29 = scalar_lea.hbm %s3902_s2, %s2104_s24 }
 0x1f8   : > { %1177 = vrot.lane.b32.xlu0 %v3103_v59, %s2368_s30 }
 0x1f9   : > { %v1400_v46 = vpop.permute.xlu1 %1399 }
 0x1fa   : > { %1490 = vst.msk [vmem:[#allocation3 + $0x30] sm:$0xff] %vm1483_vm11, %v1400_v46  ;;  %v1434_v11 = vpop.permute.xlu0 %1433 }
 0x1fb   : > { %1147 = vrot.lane.b32.xlu1 %v4048_v3, %s2368_s30  ;;  %1507 = vst.msk [vmem:[#allocation3 + $0xb8] sm:$0xff] %vm1483_vm11, %v1434_v11 }
 0x1fc   : > { %1149 = vrot.lane.b32.xlu0 %v4051_v19, %s2368_s30 }
 0x1fd   : > { %v1432_v41 = vpop.permute.xlu1 %1431 }
 0x1fe   : > { %1506 = vst.msk [vmem:[#allocation3 + $0xb0] sm:$0xff] %vm1483_vm11, %v1432_v41  ;;  %v1532_v59 = vpop.permute.xlu0 %1531 }
 0x1ff   : > { %1179 = vrot.lane.b32.xlu1 %v3122_v58, %s2368_s30  ;;  %1623 = vst.msk [vmem:[#allocation3 + $0x28] sm:$0xff] %vm1617_vm12, %v1532_v59  ;;  %v4053_v58 = vld [vmem:[#allocation7_spill] sm:$0xff] }
 0x200   : > { %1181 = vrot.lane.b32.xlu0 %v3644_v20, %s2368_s30 }
 0x201   : > { %v1530_v51 = vpop.permute.xlu1 %1529 }
 0x202   : > { %1622 = vst.msk [vmem:[#allocation3 + $0x20] sm:$0xff] %vm1617_vm12, %v1530_v51  ;;  %v1564_v52 = vpop.permute.xlu0 %1563 }
 0x203   : > { %1151 = vrot.lane.b32.xlu1 %v4052_v15, %s2368_s30  ;;  %1639 = vst.msk [vmem:[#allocation3 + $0xa8] sm:$0xff] %vm1617_vm12, %v1564_v52 }
 0x204   : > { %1276 = vrot.lane.b32.xlu0 %v4053_v58, %s2369_s3 }
 0x205   : > { %v1562_v25 = vpop.permute.xlu1 %1561 }
 0x206   : > { %1638 = vst.msk [vmem:[#allocation3 + $0xa0] sm:$0xff] %vm1617_vm12, %v1562_v25  ;;  %v1536_v45 = vpop.permute.xlu0 %1535  ;;  %v1655_v42 = vld [vmem:[#allocation3 + $0x28] sm:$0xff] }
 0x207   : > { %1183 = vrot.lane.b32.xlu1 %v3657_v13, %s2368_s30  ;;  %1625 = vst.msk [vmem:[#allocation3 + $0x38] sm:$0xff] %vm1617_vm12, %v1536_v45  ;;  %s2301_s30 = scalar_lea.vmem %s3854_s25, 4096 }
 0x208   : > { %1308 = vrot.lane.b32.xlu0 %v3208_v56, %s2369_s3  ;;  %v3674_v56 = vld [vmem:[#allocation2 + $0x198] sm:$0xff]  ;;  %p2302_p11 = scmp.ne.s32.totalorder %s3854_s25, %s2301_s30 }
 0x209   : > { %v1534_v8 = vpop.permute.xlu1 %1533  ;;  %v1654_v55 = vld [vmem:[#allocation3 + $0x20] sm:$0xff]  ;;  %v1382_v3 = vrot.slane %v3674_v56, 1 }
 0x20a   : > { %1624 = vst.msk [vmem:[#allocation3 + $0x30] sm:$0xff] %vm1617_vm12, %v1534_v8  ;;  %v1684_v53 = vpack.c.bf16 %v1655_v42, %v1654_v55  ;;  %v1568_v33 = vpop.permute.xlu0 %1567  ;;  %v1671_v26 = vld [vmem:[#allocation3 + $0xa8] sm:$0xff]  ;;  %p2303_p12 = pnand %p2302_p11, %p2427_p5 }
 0x20b   : > { %1278 = vrot.lane.b32.xlu1 %v4054_v23, %s2369_s3  ;;  %1641 = vst.msk [vmem:[#allocation3 + $0xb8] sm:$0xff] %vm1617_vm12, %v1568_v33 }
 0x20c   : > { %2213 = vmatprep.mubr.msk.bf16.mxu0 %vm1718_vm13, %v1684_v53  ;;  %1280 = vrot.lane.b32.xlu0 %v4055_v30, %s2369_s3  ;;  %p2304_p13 = pneg %p2303_p12 }
 0x20d   : > { %v1566_v10 = vpop.permute.xlu1 %1565  ;;  %v1670_v17 = vld [vmem:[#allocation3 + $0xa0] sm:$0xff] }
 0x20e   : > { %1640 = vst.msk [vmem:[#allocation3 + $0xb0] sm:$0xff] %vm1617_vm12, %v1566_v10  ;;  %v1692_v49 = vpack.c.bf16 %v1671_v26, %v1670_v17  ;;  %v1038_v7 = vpop.permute.xlu0 %1037  ;;  %v1657_v62 = vld [vmem:[#allocation3 + $0x38] sm:$0xff] }
 0x20f   : > { %1310 = vrot.lane.b32.xlu1 %v3222_v24, %s2369_s3  ;;  %1109 = vst.msk [vmem:[#allocation3 + $0xc8] sm:$0xff] %vm1083_vm8, %v1038_v7  ;;  %v3688_v24 = vld [vmem:[#allocation2 + $0x1a0] sm:$0xff] }
 0x210   : > { %2229 = vmatprep.mubr.msk.bf16.mxu1 %vm1718_vm13, %v1692_v49  ;;  %1312 = vrot.lane.b32.xlu0 %v3674_v56, %s2369_s3  ;;  %v1383_v39 = vrot.slane %v3688_v24, 1  ;;  %v1517_v31 = vrot.slane %v3688_v24, 2 }
 0x211   : > { %v1036_v60 = vpop.permute.xlu1 %1035  ;;  %v1656_v6 = vld [vmem:[#allocation3 + $0x30] sm:$0xff] }
 0x212   : > { %1108 = vst.msk [vmem:[#allocation3 + $0xc0] sm:$0xff] %vm1083_vm8, %v1036_v60  ;;  %v1685_v63 = vpack.c.bf16 %v1657_v62, %v1656_v6  ;;  %v1040_v57 = vpop.permute.xlu0 %1039  ;;  %v1673_v48 = vld [vmem:[#allocation3 + $0xb8] sm:$0xff]  ;;  %v1384_v14 = vsel %vm430_vm2, %v1382_v3, %v1383_v39 }
 0x213   : > { %1282 = vrot.lane.b32.xlu1 %v4056_v35, %s2369_s3  ;;  %1110 = vst.msk [vmem:[#allocation3 + $0xd0] sm:$0xff] %vm1083_vm8, %v1040_v57 }
 0x214   : > { %2214 = vmatmul.mubr.msk.bf16.gmra.mxu0 %vm1718_vm13, %v1685_v63  ;;  %1411 = vrot.lane.b32.xlu0 %v4049_v61, %s2370_s4 }
 0x215   : > { %v1010_v37 = vpop.permute.xlu1 %1009  ;;  %v1672_v32 = vld [vmem:[#allocation3 + $0xb0] sm:$0xff] }
 0x216   : > { %1095 = vst.msk [vmem:[#allocation3 + $0x58] sm:$0xff] %vm1083_vm8, %v1010_v37  ;;  %v1693_v44 = vpack.c.bf16 %v1673_v48, %v1672_v32  ;;  %v1138_v4 = vpop.permute.xlu0 %1137 }
 0x217   : > { %1314 = vrot.lane.b32.xlu1 %v3688_v24, %s2369_s3  ;;  %1226 = vst.msk [vmem:[#allocation3 + $0x40] sm:$0xff] %vm1217_vm9, %v1138_v4  ;;  %s2372_s3 = smov [#allocation4]  }
 0x218   : > { %2230 = vmatmul.mubr.msk.bf16.gmra.mxu1 %vm1718_vm13, %v1693_v44  ;;  %1443 = vrot.lane.b32.xlu0 %v3612_v54, %s2370_s4 }
 0x219   : > { %v1042_v43 = vpop.permute.xlu1 %1041 }
 0x21a   : > { %1111 = vst.msk [vmem:[#allocation3 + $0xd8] sm:$0xff] %vm1083_vm8, %v1042_v43  ;;  %v1170_v38 = vpop.permute.xlu0 %1169 }
 0x21b   : > { %1413 = vrot.lane.b32.xlu1 %v4050_v28, %s2370_s4  ;;  %1242 = vst.msk [vmem:[#allocation3 + $0xc0] sm:$0xff] %vm1217_vm9, %v1170_v38 }
 0x21c   : > { %1415 = vrot.lane.b32.xlu0 %v4026_v34, %s2370_s4  ;;  %v1386_v34 = vsel %vm430_vm2, %v1383_v39, %v1385_v0 }
 0x21d   : > { %v1140_v18 = vpop.permute.xlu1 %1139 }
 0x21e   : > { %1227 = vst.msk [vmem:[#allocation3 + $0x48] sm:$0xff] %vm1217_vm9, %v1140_v18  ;;  %v1142_v61 = vpop.permute.xlu0 %1141 }
 0x21f   : > { %1445 = vrot.lane.b32.xlu1 %v3625_v29, %s2370_s4  ;;  %1228 = vst.msk [vmem:[#allocation3 + $0x50] sm:$0xff] %vm1217_vm9, %v1142_v61 }
 0x220   : > { %1447 = vrot.lane.b32.xlu0 %v1384_v14, %s2370_s4 }
 0x221   : > { %v1172_v54 = vpop.permute.xlu1 %1171 }
 0x222   : > { %1243 = vst.msk [vmem:[#allocation3 + $0xc8] sm:$0xff] %vm1217_vm9, %v1172_v54  ;;  %v1174_v36 = vpop.permute.xlu0 %1173 }
 0x223   : > { %1417 = vrot.lane.b32.xlu1 %v4025_v47, %s2370_s4  ;;  %1244 = vst.msk [vmem:[#allocation3 + $0xd0] sm:$0xff] %vm1217_vm9, %v1174_v36  ;;  %v1516_v47 = vrot.slane %v3674_v56, 2 }
 0x224   : > { %1545 = vrot.lane.b32.xlu0 %v4051_v19, %s2371_s14 }
 0x225   : > { %v1144_v9 = vpop.permute.xlu1 %1143  ;;  %v1518_v27 = vsel %vm640_vm3, %v1516_v47, %v1517_v31 }
 0x226   : > { %1229 = vst.msk [vmem:[#allocation3 + $0x58] sm:$0xff] %vm1217_vm9, %v1144_v9  ;;  %v1269_v2 = vpop.permute.xlu0 %1268 }
 0x227   : > { %1449 = vrot.lane.b32.xlu1 %v1386_v34, %s2370_s4  ;;  %1357 = vst.msk [vmem:[#allocation3 + $0x40] sm:$0xff] %vm1348_vm10, %v1269_v2  ;;  %s2305_s4 = sshll.u32 %s2372_s3, 4  ;;  %s2306_s4 = int_to_ptr.vmem [resolvable:$false] %s2305_s4 }
 0x228   : > { %1577 = vrot.lane.b32.xlu0 %v3644_v20, %s2371_s14  ;;  %s2307_s5 = scalar_lea.vmem %s2306_s4, 8192  ;;  %p2308_p0 = scmp.lt.s32.totalorder %s3854_s25, %s2306_s4 }
 0x229   : > { %v1176_v1 = vpop.permute.xlu1 %1175  ;;  %p2309_p1 = scmp.lt.s32.totalorder %s2307_s5, %s2301_s30 }
 0x22a   : > { %1245 = vst.msk [vmem:[#allocation3 + $0xd8] sm:$0xff] %vm1217_vm9, %v1176_v1  ;;  %v1301_v28 = vpop.permute.xlu0 %1300 }
 0x22b   : > { %1547 = vrot.lane.b32.xlu1 %v4052_v15, %s2371_s14  ;;  %1373 = vst.msk [vmem:[#allocation3 + $0xc0] sm:$0xff] %vm1348_vm10, %v1301_v28  ;;  %p2310_p2 = por %p2309_p1, %p2308_p0 }
 0x22c   : > { %1549 = vrot.lane.b32.xlu0 %v3023_v22, %s2371_s14  ;;  %v1520_v22 = vsel %vm640_vm3, %v1517_v31, %v1519_v16 }
 0x22d   : > { %v1271_v29 = vpop.permute.xlu1 %1270  ;;  %p2311_p3 = pnand %p2310_p2, %p2304_p13 }
 0x22e   : > { %1358 = vst.msk [vmem:[#allocation3 + $0x48] sm:$0xff] %vm1348_vm10, %v1271_v29  ;;  %v1273_v21 = vpop.permute.xlu0 %1272 }
 0x22f   : > { %1579 = vrot.lane.b32.xlu1 %v3657_v13, %s2371_s14  ;;  %1359 = vst.msk [vmem:[#allocation3 + $0x50] sm:$0xff] %vm1348_vm10, %v1273_v21 }
 0x230   : > { %1581 = vrot.lane.b32.xlu0 %v1518_v27, %s2371_s14 }
 0x231   : > { %v1303_v12 = vpop.permute.xlu1 %1302 }
 0x232   : > { %1374 = vst.msk [vmem:[#allocation3 + $0xc8] sm:$0xff] %vm1348_vm10, %v1303_v12  ;;  %v1305_v46 = vpop.permute.xlu0 %1304 }
 0x233   : > { %1551 = vrot.lane.b32.xlu1 %v3045_v50, %s2371_s14  ;;  %1375 = vst.msk [vmem:[#allocation3 + $0xd0] sm:$0xff] %vm1348_vm10, %v1305_v46 }
 0x235   : > { %v1275_v11 = vpop.permute.xlu1 %1274 }
 0x236   : > { %1360 = vst.msk [vmem:[#allocation3 + $0x58] sm:$0xff] %vm1348_vm10, %v1275_v11  ;;  %v1404_v19 = vpop.permute.xlu0 %1403 }
 0x237   : > { %1583 = vrot.lane.b32.xlu1 %v1520_v22, %s2371_s14  ;;  %1492 = vst.msk [vmem:[#allocation3 + $0x40] sm:$0xff] %vm1483_vm11, %v1404_v19 }
 0x239   : > { %v1307_v41 = vpop.permute.xlu1 %1306 }
 0x23a   : > { %1376 = vst.msk [vmem:[#allocation3 + $0xd8] sm:$0xff] %vm1348_vm10, %v1307_v41  ;;  %v1436_v20 = vpop.permute.xlu0 %1435 }
 0x23b   : > { %1508 = vst.msk [vmem:[#allocation3 + $0xc0] sm:$0xff] %vm1483_vm11, %v1436_v20 }
 0x23d   : > { %v1406_v59 = vpop.permute.xlu1 %1405 }
 0x23e   : > { %1493 = vst.msk [vmem:[#allocation3 + $0x48] sm:$0xff] %vm1483_vm11, %v1406_v59  ;;  %v1408_v50 = vpop.permute.xlu0 %1407 }
 0x23f   : > { %1494 = vst.msk [vmem:[#allocation3 + $0x50] sm:$0xff] %vm1483_vm11, %v1408_v50 }
 0x241   : > { %v1438_v40 = vpop.permute.xlu1 %1437 }
 0x242   : > { %1509 = vst.msk [vmem:[#allocation3 + $0xc8] sm:$0xff] %vm1483_vm11, %v1438_v40  ;;  %v1440_v51 = vpop.permute.xlu0 %1439 }
 0x243   : > { %1510 = vst.msk [vmem:[#allocation3 + $0xd0] sm:$0xff] %vm1483_vm11, %v1440_v51 }
 0x245   : > { %v1410_v52 = vpop.permute.xlu1 %1409 }
 0x246   : > { %1495 = vst.msk [vmem:[#allocation3 + $0x58] sm:$0xff] %vm1483_vm11, %v1410_v52  ;;  %v1538_v15 = vpop.permute.xlu0 %1537 }
 0x247   : > { %1626 = vst.msk [vmem:[#allocation3 + $0x40] sm:$0xff] %vm1617_vm12, %v1538_v15 }
 0x249   : > { %v1442_v13 = vpop.permute.xlu1 %1441 }
 0x24a   : > { %1511 = vst.msk [vmem:[#allocation3 + $0xd8] sm:$0xff] %vm1483_vm11, %v1442_v13  ;;  %v1570_v58 = vpop.permute.xlu0 %1569 }
 0x24b   : > { %1642 = vst.msk [vmem:[#allocation3 + $0xc0] sm:$0xff] %vm1617_vm12, %v1570_v58 }
 0x24d   : > { %v1540_v25 = vpop.permute.xlu1 %1539 }
 0x24e   : > { %1627 = vst.msk [vmem:[#allocation3 + $0x48] sm:$0xff] %vm1617_vm12, %v1540_v25  ;;  %v1542_v45 = vpop.permute.xlu0 %1541  ;;  %v1658_v55 = vld [vmem:[#allocation3 + $0x40] sm:$0xff] }
 0x24f   : > { %1628 = vst.msk [vmem:[#allocation3 + $0x50] sm:$0xff] %vm1617_vm12, %v1542_v45 }
 0x251   : > { %v1572_v42 = vpop.permute.xlu1 %1571 }
 0x252   : > { %1643 = vst.msk [vmem:[#allocation3 + $0xc8] sm:$0xff] %vm1617_vm12, %v1572_v42  ;;  %v1574_v8 = vpop.permute.xlu0 %1573  ;;  %v1674_v30 = vld [vmem:[#allocation3 + $0xc0] sm:$0xff] }
 0x253   : > { %1644 = vst.msk [vmem:[#allocation3 + $0xd0] sm:$0xff] %vm1617_vm12, %v1574_v8 }
 0x255   : > { %v1544_v53 = vpop.permute.xlu1 %1543  ;;  %v1659_v33 = vld [vmem:[#allocation3 + $0x48] sm:$0xff] }
 0x256   : > { %1629 = vst.msk [vmem:[#allocation3 + $0x58] sm:$0xff] %vm1617_vm12, %v1544_v53  ;;  %v1686_v23 = vpack.c.bf16 %v1659_v33, %v1658_v55  ;;  %v1012_v26 = vpop.permute.xlu0 %1011  ;;  %v1660_v7 = vld [vmem:[#allocation3 + $0x50] sm:$0xff] }
 0x257   : > { %1096 = vst.msk [vmem:[#allocation3 + $0x60] sm:$0xff] %vm1083_vm8, %v1012_v26 }
 0x258   : > { %2217 = vmatprep.mubr.msk.bf16.mxu0 %vm1718_vm13, %v1686_v23 }
 0x259   : > { %v1576_v10 = vpop.permute.xlu1 %1575  ;;  %v1675_v17 = vld [vmem:[#allocation3 + $0xc8] sm:$0xff] }
 0x25a   : > { %1645 = vst.msk [vmem:[#allocation3 + $0xd8] sm:$0xff] %vm1617_vm12, %v1576_v10  ;;  %v1694_v56 = vpack.c.bf16 %v1675_v17, %v1674_v30  ;;  %v1044_v49 = vpop.permute.xlu0 %1043  ;;  %v1676_v57 = vld [vmem:[#allocation3 + $0xd0] sm:$0xff] }
 0x25b   : > { %1112 = vst.msk [vmem:[#allocation3 + $0xe0] sm:$0xff] %vm1083_vm8, %v1044_v49 }
 0x25c   : > { %2233 = vmatprep.mubr.msk.bf16.mxu1 %vm1718_vm13, %v1694_v56 }
 0x25d   : > { %v1014_v62 = vpop.permute.xlu1 %1013  ;;  %v1661_v60 = vld [vmem:[#allocation3 + $0x58] sm:$0xff] }
 0x25e   : > { %1097 = vst.msk [vmem:[#allocation3 + $0x68] sm:$0xff] %vm1083_vm8, %v1014_v62  ;;  %v1687_v6 = vpack.c.bf16 %v1661_v60, %v1660_v7  ;;  %v1016_v63 = vpop.permute.xlu0 %1015 }
 0x25f   : > { %1098 = vst.msk [vmem:[#allocation3 + $0x70] sm:$0xff] %vm1083_vm8, %v1016_v63 }
 0x260   : > { %2218 = vmatmul.mubr.msk.bf16.gmra.mxu0 %vm1718_vm13, %v1687_v6 }
 0x261   : > { %v1046_v35 = vpop.permute.xlu1 %1045  ;;  %v1677_v48 = vld [vmem:[#allocation3 + $0xd8] sm:$0xff] }
 0x262   : > { %1113 = vst.msk [vmem:[#allocation3 + $0xe8] sm:$0xff] %vm1083_vm8, %v1046_v35  ;;  %v1695_v24 = vpack.c.bf16 %v1677_v48, %v1676_v57  ;;  %v1048_v37 = vpop.permute.xlu0 %1047 }
 0x263   : > { %1114 = vst.msk [vmem:[#allocation3 + $0xf0] sm:$0xff] %vm1083_vm8, %v1048_v37 }
 0x264   : > { %2234 = vmatmul.mubr.msk.bf16.gmra.mxu1 %vm1718_vm13, %v1695_v24 }
 0x265   : > { %v1018_v32 = vpop.permute.xlu1 %1017 }
 0x266   : > { %1099 = vst.msk [vmem:[#allocation3 + $0x78] sm:$0xff] %vm1083_vm8, %v1018_v32  ;;  %v1146_v44 = vpop.permute.xlu0 %1145 }
 0x267   : > { %1230 = vst.msk [vmem:[#allocation3 + $0x60] sm:$0xff] %vm1217_vm9, %v1146_v44 }
 0x269   : > { %v1050_v4 = vpop.permute.xlu1 %1049 }
 0x26a   : > { %1115 = vst.msk [vmem:[#allocation3 + $0xf8] sm:$0xff] %vm1083_vm8, %v1050_v4  ;;  %v1178_v3 = vpop.permute.xlu0 %1177 }
 0x26b   : > { %1246 = vst.msk [vmem:[#allocation3 + $0xe0] sm:$0xff] %vm1217_vm9, %v1178_v3 }
 0x26d   : > { %v1148_v39 = vpop.permute.xlu1 %1147 }
 0x26e   : > { %1231 = vst.msk [vmem:[#allocation3 + $0x68] sm:$0xff] %vm1217_vm9, %v1148_v39  ;;  %v1150_v43 = vpop.permute.xlu0 %1149 }
 0x26f   : > { %1232 = vst.msk [vmem:[#allocation3 + $0x70] sm:$0xff] %vm1217_vm9, %v1150_v43 }
 0x271   : > { %v1180_v38 = vpop.permute.xlu1 %1179 }
 0x272   : > { %1247 = vst.msk [vmem:[#allocation3 + $0xe8] sm:$0xff] %vm1217_vm9, %v1180_v38  ;;  %v1182_v18 = vpop.permute.xlu0 %1181 }
 0x273   : > { %1248 = vst.msk [vmem:[#allocation3 + $0xf0] sm:$0xff] %vm1217_vm9, %v1182_v18 }
 0x275   : > { %v1152_v14 = vpop.permute.xlu1 %1151 }
 0x276   : > { %1233 = vst.msk [vmem:[#allocation3 + $0x78] sm:$0xff] %vm1217_vm9, %v1152_v14  ;;  %v1277_v5 = vpop.permute.xlu0 %1276 }
 0x277   : > { %1361 = vst.msk [vmem:[#allocation3 + $0x60] sm:$0xff] %vm1348_vm10, %v1277_v5 }
 0x279   : > { %v1184_v61 = vpop.permute.xlu1 %1183 }
 0x27a   : > { %1249 = vst.msk [vmem:[#allocation3 + $0xf8] sm:$0xff] %vm1217_vm9, %v1184_v61  ;;  %v1309_v0 = vpop.permute.xlu0 %1308 }
 0x27b   : > { %1377 = vst.msk [vmem:[#allocation3 + $0xe0] sm:$0xff] %vm1348_vm10, %v1309_v0 }
 0x27d   : > { %v1279_v54 = vpop.permute.xlu1 %1278 }
 0x27e   : > { %1362 = vst.msk [vmem:[#allocation3 + $0x68] sm:$0xff] %vm1348_vm10, %v1279_v54  ;;  %v1281_v36 = vpop.permute.xlu0 %1280 }
 0x27f   : > { %1363 = vst.msk [vmem:[#allocation3 + $0x70] sm:$0xff] %vm1348_vm10, %v1281_v36 }
 0x281   : > { %v1311_v34 = vpop.permute.xlu1 %1310 }
 0x282   : > { %1378 = vst.msk [vmem:[#allocation3 + $0xe8] sm:$0xff] %vm1348_vm10, %v1311_v34  ;;  %v1313_v9 = vpop.permute.xlu0 %1312 }
 0x283   : > { %1379 = vst.msk [vmem:[#allocation3 + $0xf0] sm:$0xff] %vm1348_vm10, %v1313_v9 }
 0x285   : > { %v1283_v2 = vpop.permute.xlu1 %1282 }
 0x286   : > { %1364 = vst.msk [vmem:[#allocation3 + $0x78] sm:$0xff] %vm1348_vm10, %v1283_v2  ;;  %v1412_v47 = vpop.permute.xlu0 %1411 }
 0x287   : > { %1496 = vst.msk [vmem:[#allocation3 + $0x60] sm:$0xff] %vm1483_vm11, %v1412_v47 }
 0x289   : > { %v1315_v31 = vpop.permute.xlu1 %1314 }
 0x28a   : > { %1380 = vst.msk [vmem:[#allocation3 + $0xf8] sm:$0xff] %vm1348_vm10, %v1315_v31  ;;  %v1444_v1 = vpop.permute.xlu0 %1443 }
 0x28b   : > { %1512 = vst.msk [vmem:[#allocation3 + $0xe0] sm:$0xff] %vm1483_vm11, %v1444_v1 }
 0x28c   : > { %v2211_v28 = vpop.f32.mrf.mxu0 }
 0x28d   : > { %v1934_v29 = vmax.f32 %v2211_v28, 0.0  ;;  %v1414_v27 = vpop.permute.xlu1 %1413 }
 0x28e   : > { %1497 = vst.msk [vmem:[#allocation3 + $0x68] sm:$0xff] %vm1483_vm11, %v1414_v27  ;;  %v1805_v21 = vpop.f32.mrf.mxu0  ;;  %v1416_v16 = vpop.permute.xlu0 %1415 }
 0x28f   : > { %1966 = vst [vmem:[%s3797_s23 + $0x10] sm:$0xff] %v1934_v29  ;;  %v1932_v12 = vmax.f32 %v1805_v21, 0.0  ;;  %1498 = vst.msk [vmem:[#allocation3 + $0x70] sm:$0xff] %vm1483_vm11, %v1416_v16 }
 0x290   : > { %v2212_v46 = vpop.f32.mrf.mxu0  ;;  %v2227_v22 = vpop.f32.mrf.mxu1 }
 0x291   : > { %1964 = vst [vmem:[%s3797_s23] sm:$0xff] %v1932_v12  ;;  %v1935_v11 = vmax.f32 %v2212_v46, 0.0  ;;  %v1950_v19 = vmax.f32 %v2227_v22, 0.0  ;;  %v1446_v41 = vpop.permute.xlu1 %1445 }
 0x292   : > { %1513 = vst.msk [vmem:[#allocation3 + $0xe8] sm:$0xff] %vm1483_vm11, %v1446_v41  ;;  %v1808_v20 = vpop.f32.mrf.mxu0  ;;  %v1869_v59 = vpop.f32.mrf.mxu1 }
 0x293   : > { %1967 = vst [vmem:[%s3797_s23 + $0x18] sm:$0xff] %v1935_v11  ;;  %1982 = vst [vmem:[%s3797_s23 + $0x90] sm:$0xff] %v1950_v19  ;;  %v1933_v50 = vmax.f32 %v1808_v20, 0.0  ;;  %v1948_v40 = vmax.f32 %v1869_v59, 0.0  ;;  %v1448_v51 = vpop.permute.xlu0 %1447 }
 0x294   : > { %v2228_v52 = vpop.f32.mrf.mxu1  ;;  %1514 = vst.msk [vmem:[#allocation3 + $0xf0] sm:$0xff] %vm1483_vm11, %v1448_v51 }
 0x295   : > { %1965 = vst [vmem:[%s3797_s23 + $0x8] sm:$0xff] %v1933_v50  ;;  %1980 = vst [vmem:[%s3797_s23 + $0x80] sm:$0xff] %v1948_v40  ;;  %v1951_v15 = vmax.f32 %v2228_v52, 0.0  ;;  %v1418_v13 = vpop.permute.xlu1 %1417 }
 0x296   : > { %1499 = vst.msk [vmem:[#allocation3 + $0x78] sm:$0xff] %vm1483_vm11, %v1418_v13  ;;  %v1872_v58 = vpop.f32.mrf.mxu1 }
 0x297   : > { %1983 = vst [vmem:[%s3797_s23 + $0x98] sm:$0xff] %v1951_v15  ;;  %v1949_v25 = vmax.f32 %v1872_v58, 0.0  ;;  %v1546_v45 = vpop.permute.xlu0 %1545 }
 0x298   : > { %1630 = vst.msk [vmem:[#allocation3 + $0x60] sm:$0xff] %vm1617_vm12, %v1546_v45 }
 0x299   : > { %1981 = vst [vmem:[%s3797_s23 + $0x88] sm:$0xff] %v1949_v25  ;;  %v1450_v42 = vpop.permute.xlu1 %1449 }
 0x29a   : > { %1515 = vst.msk [vmem:[#allocation3 + $0xf8] sm:$0xff] %vm1483_vm11, %v1450_v42 }
 0x29b   : > { %v1578_v8 = vpop.permute.xlu0 %1577 }
 0x29c   : > { %1646 = vst.msk [vmem:[#allocation3 + $0xe0] sm:$0xff] %vm1617_vm12, %v1578_v8 }
 0x29d   : > { %v1548_v55 = vpop.permute.xlu1 %1547 }
 0x29e   : > { %1631 = vst.msk [vmem:[#allocation3 + $0x68] sm:$0xff] %vm1617_vm12, %v1548_v55 }
 0x29f   : > { %v1550_v53 = vpop.permute.xlu0 %1549  ;;  %v1662_v23 = vld [vmem:[#allocation3 + $0x60] sm:$0xff] }
 0x2a0   : > { %1632 = vst.msk [vmem:[#allocation3 + $0x70] sm:$0xff] %vm1617_vm12, %v1550_v53 }
 0x2a1   : > { %v1580_v33 = vpop.permute.xlu1 %1579 }
 0x2a2   : > { %1647 = vst.msk [vmem:[#allocation3 + $0xe8] sm:$0xff] %vm1617_vm12, %v1580_v33 }
 0x2a3   : > { %v1582_v26 = vpop.permute.xlu0 %1581  ;;  %v1678_v56 = vld [vmem:[#allocation3 + $0xe0] sm:$0xff] }
 0x2a4   : > { %1648 = vst.msk [vmem:[#allocation3 + $0xf0] sm:$0xff] %vm1617_vm12, %v1582_v26 }
 0x2a5   : > { %v1552_v30 = vpop.permute.xlu1 %1551  ;;  %v1663_v10 = vld [vmem:[#allocation3 + $0x68] sm:$0xff] }
 0x2a6   : > { %1633 = vst.msk [vmem:[#allocation3 + $0x78] sm:$0xff] %vm1617_vm12, %v1552_v30  ;;  %v1688_v17 = vpack.c.bf16 %v1663_v10, %v1662_v23 }
 0x2a7   : > { %v1664_v60 = vld [vmem:[#allocation3 + $0x70] sm:$0xff] }
 0x2a8   : > { %2221 = vmatprep.mubr.msk.bf16.mxu0 %vm1718_vm13, %v1688_v17 }
 0x2a9   : > { %v1584_v49 = vpop.permute.xlu1 %1583  ;;  %v1679_v7 = vld [vmem:[#allocation3 + $0xe8] sm:$0xff] }
 0x2aa   : > { %1649 = vst.msk [vmem:[#allocation3 + $0xf8] sm:$0xff] %vm1617_vm12, %v1584_v49  ;;  %v1696_v62 = vpack.c.bf16 %v1679_v7, %v1678_v56 }
 0x2ab   : > { %v1680_v57 = vld [vmem:[#allocation3 + $0xf0] sm:$0xff] }
 0x2ac   : > { %2237 = vmatprep.mubr.msk.bf16.mxu1 %vm1718_vm13, %v1696_v62 }
 0x2ad   : > { %v1665_v6 = vld [vmem:[#allocation3 + $0x78] sm:$0xff] }
 0x2ae   : > { %v1689_v63 = vpack.c.bf16 %v1665_v6, %v1664_v60 }
 0x2b0   : > { %2222 = vmatmul.mubr.msk.bf16.gmra.mxu0 %vm1718_vm13, %v1689_v63 }
 0x2b1   : > { %v1681_v35 = vld [vmem:[#allocation3 + $0xf8] sm:$0xff] }
 0x2b2   : > { %v1697_v48 = vpack.c.bf16 %v1681_v35, %v1680_v57 }
 0x2b4   : > { %2238 = vmatmul.mubr.msk.bf16.gmra.mxu1 %vm1718_vm13, %v1697_v48 }
 0x2d4   : > { %v2215_v24 = vpop.f32.mrf.mxu0 }
 0x2d5   : > { %v1938_v37 = vmax.f32 %v2215_v24, 0.0 }
 0x2d6   : > { %v1821_v32 = vpop.f32.mrf.mxu0 }
 0x2d7   : > { %1970 = vst [vmem:[%s3797_s23 + $0x30] sm:$0xff] %v1938_v37  ;;  %v1936_v44 = vmax.f32 %v1821_v32, 0.0 }
 0x2d8   : > { %v2216_v4 = vpop.f32.mrf.mxu0  ;;  %v2231_v3 = vpop.f32.mrf.mxu1 }
 0x2d9   : > { %1968 = vst [vmem:[%s3797_s23 + $0x20] sm:$0xff] %v1936_v44  ;;  %v1939_v39 = vmax.f32 %v2216_v4, 0.0  ;;  %v1954_v43 = vmax.f32 %v2231_v3, 0.0 }
 0x2da   : > { %v1824_v38 = vpop.f32.mrf.mxu0  ;;  %v1885_v18 = vpop.f32.mrf.mxu1 }
 0x2db   : > { %1971 = vst [vmem:[%s3797_s23 + $0x38] sm:$0xff] %v1939_v39  ;;  %1986 = vst [vmem:[%s3797_s23 + $0xb0] sm:$0xff] %v1954_v43  ;;  %v1937_v14 = vmax.f32 %v1824_v38, 0.0  ;;  %v1952_v5 = vmax.f32 %v1885_v18, 0.0 }
 0x2dc   : > { %v2232_v61 = vpop.f32.mrf.mxu1 }
 0x2dd   : > { %1969 = vst [vmem:[%s3797_s23 + $0x28] sm:$0xff] %v1937_v14  ;;  %1984 = vst [vmem:[%s3797_s23 + $0xa0] sm:$0xff] %v1952_v5  ;;  %v1955_v0 = vmax.f32 %v2232_v61, 0.0 }
 0x2de   : > { %v1888_v54 = vpop.f32.mrf.mxu1 }
 0x2df   : > { %1987 = vst [vmem:[%s3797_s23 + $0xb8] sm:$0xff] %v1955_v0  ;;  %v1953_v36 = vmax.f32 %v1888_v54, 0.0 }
 0x2e1   : > { %1985 = vst [vmem:[%s3797_s23 + $0xa8] sm:$0xff] %v1953_v36 }
 0x320   : > { %v2219_v34 = vpop.f32.mrf.mxu0 }
 0x321   : > { %v1942_v9 = vmax.f32 %v2219_v34, 0.0 }
 0x322   : > { %v1837_v2 = vpop.f32.mrf.mxu0 }
 0x323   : > { %1974 = vst [vmem:[%s3797_s23 + $0x50] sm:$0xff] %v1942_v9  ;;  %v1940_v47 = vmax.f32 %v1837_v2, 0.0 }
 0x324   : > { %v2220_v31 = vpop.f32.mrf.mxu0  ;;  %v2235_v1 = vpop.f32.mrf.mxu1 }
 0x325   : > { %1972 = vst [vmem:[%s3797_s23 + $0x40] sm:$0xff] %v1940_v47  ;;  %v1943_v28 = vmax.f32 %v2220_v31, 0.0  ;;  %v1958_v29 = vmax.f32 %v2235_v1, 0.0 }
 0x326   : > { %v1840_v27 = vpop.f32.mrf.mxu0  ;;  %v1901_v21 = vpop.f32.mrf.mxu1 }
 0x327   : > { %1975 = vst [vmem:[%s3797_s23 + $0x58] sm:$0xff] %v1943_v28  ;;  %1990 = vst [vmem:[%s3797_s23 + $0xd0] sm:$0xff] %v1958_v29  ;;  %v1941_v16 = vmax.f32 %v1840_v27, 0.0  ;;  %v1956_v12 = vmax.f32 %v1901_v21, 0.0 }
 0x328   : > { %v2236_v46 = vpop.f32.mrf.mxu1 }
 0x329   : > { %1973 = vst [vmem:[%s3797_s23 + $0x48] sm:$0xff] %v1941_v16  ;;  %1988 = vst [vmem:[%s3797_s23 + $0xc0] sm:$0xff] %v1956_v12  ;;  %v1959_v22 = vmax.f32 %v2236_v46, 0.0 }
 0x32a   : > { %v1904_v11 = vpop.f32.mrf.mxu1 }
 0x32b   : > { %1991 = vst [vmem:[%s3797_s23 + $0xd8] sm:$0xff] %v1959_v22  ;;  %v1957_v19 = vmax.f32 %v1904_v11, 0.0 }
 0x32d   : > { %1989 = vst [vmem:[%s3797_s23 + $0xc8] sm:$0xff] %v1957_v19 }
 0x370   : > { %v2223_v41 = vpop.f32.mrf.mxu0 }
 0x371   : > { %v1946_v20 = vmax.f32 %v2223_v41, 0.0 }
 0x372   : > { %v1853_v59 = vpop.f32.mrf.mxu0 }
 0x373   : > { %1978 = vst [vmem:[%s3797_s23 + $0x70] sm:$0xff] %v1946_v20  ;;  %v1944_v50 = vmax.f32 %v1853_v59, 0.0 }
 0x374   : > { %v2224_v40 = vpop.f32.mrf.mxu0  ;;  %v2239_v51 = vpop.f32.mrf.mxu1 }
 0x375   : > { %1976 = vst [vmem:[%s3797_s23 + $0x60] sm:$0xff] %v1944_v50  ;;  %v1947_v52 = vmax.f32 %v2224_v40, 0.0  ;;  %v1962_v15 = vmax.f32 %v2239_v51, 0.0 }
 0x376   : > { %v1856_v13 = vpop.f32.mrf.mxu0  ;;  %v1917_v58 = vpop.f32.mrf.mxu1 }
 0x377   : > { %1979 = vst [vmem:[%s3797_s23 + $0x78] sm:$0xff] %v1947_v52  ;;  %1994 = vst [vmem:[%s3797_s23 + $0xf0] sm:$0xff] %v1962_v15  ;;  %v1945_v25 = vmax.f32 %v1856_v13, 0.0  ;;  %v1960_v45 = vmax.f32 %v1917_v58, 0.0 }
 0x378   : > { %v2240_v42 = vpop.f32.mrf.mxu1 }
 0x379   : > { %1977 = vst [vmem:[%s3797_s23 + $0x68] sm:$0xff] %v1945_v25  ;;  %1992 = vst [vmem:[%s3797_s23 + $0xe0] sm:$0xff] %v1960_v45  ;;  %v1963_v8 = vmax.f32 %v2240_v42, 0.0 }
 0x37a   : > { %v1920_v55 = vpop.f32.mrf.mxu1 }
 0x37b   : > { %1995 = vst [vmem:[%s3797_s23 + $0xf8] sm:$0xff] %v1963_v8  ;;  %v1961_v53 = vmax.f32 %v1920_v55, 0.0 }
 0x37d   : > { %1993 = vst [vmem:[%s3797_s23 + $0xe8] sm:$0xff] %v1961_v53 }
 0x37e   : > { %2314 = shalt.err (!%p2311_p3)
}
 0x37f   : > { %s2315_s6 = scalar_lea.hbm %s3851_s29, 4096  ;;  %s2319_s14 = scalar_lea.hbm %s3902_s2, 8192 }
 0x380   : > { %p2316_p4 = scmp.ne.s32.totalorder %s3851_s29, %s2315_s6  ;;  %p2320_p9 = scmp.lt.s32.totalorder %s3851_s29, %s3902_s2 }
 0x381   : > { %p2321_p10 = scmp.lt.s32.totalorder %s2319_s14, %s2315_s6 }
 0x382   : > { %p2317_p7 = pnand %p2316_p4, %p2427_p5 }
 0x383   : > { %p2322_p11 = por %p2321_p10, %p2320_p9 }
 0x384   : > { %p2318_p8 = pneg %p2317_p7 }
 0x386   : > { %p2323_p12 = pnand %p2322_p11, %p2318_p8 }
 0x388   : > { %2326 = shalt.err (!%p2323_p12)
}
 0x389   : > { %s2373_s21 = smov 128  }
 0x38a   : > { %2249 = dma.vmem_to_hbm [thread:$0]  (%p2427_p5), %s3854_s25, 4096, %s3851_s29, %s3859_s13, %s2373_s21, %s2373_s21, %s2365_s27  }
 0x38b PF: > { %p2255_p13 = scmp.ge.s32.totalorder %s2361_s12, 2  ;;  %s2025_s22 = sand.u32 1, %s2349_s9  }
 0x38c   : > { %s2026_s23 = scalar_lea.sflag [#allocation5], %s2025_s22 }
 0x38d   : > { %p2252_p0 = pnand %p2255_p13, %p2431_p6 }
 0x38f   : > { %p2253_p1 = pneg %p2252_p0 }
 0x391   : > { %2344 = dma.done.wait (%p2253_p1), %s2026_s23, 4096  }
 0x392   : > { %2346 = vsyncadd (%p2253_p1), %s2026_s23, 4294963200  ;;  %p12_p2 = scmp.ge.s32.totalorder %s2414_s15, 4   ;;  %s4057_s9 = smov %s2353_s10 }
 0x393   : > { %s4058_s10 = smov %s2357_s11  ;;  %s4059_s11 = smov %s2425_s18 }
 0x394   : > { %s4060_s12 = smov %s2414_s15  ;;  %14 = sbr.rel (!%p12_p2) target bundleno = 3 (0x3), region = 64 }
 0x399   :  { %2031 = vsyncpa [#allocation5], 1 }
 0x39a   :  { %2033 = vsyncpa [#allocation5 + $0x1], 1 }

</bundles_post_ra>
